<compile_context>
chip_gen: v7x
topology: tpu7x:2x2x1
jax: 0.10.0
libtpu: 0.0.40
codegen_flags: <defaults>
</compile_context>

<pallas_src>
import jax
import jax.numpy as jnp
from jax.experimental import pallas as pl
from jax.experimental.pallas import tpu as pltpu

C_IN = 3           # InputNormalize uses 3-channel ImageNet statistics
H = W = 16
HW = H * W
FEAT = 32          # stand-in for ResNet feature dim (2048 in the real model)
BOTTLE = 16        # bottleneck dim
CLASSES = 8        # class_num
TAIL = BOTTLE + CLASSES   # merged bottleneck|fc output width (24)

TB_MAX = 128       # max batch block (chosen so nb >= 2 on typical batches, v7x-friendly)
OUT_LANES = 128    # lane-dense packed output slab width
_B_OFF = 0                     # bottleneck features at lanes [0, 16)
_Y_OFF = BOTTLE                # logits            at lanes [16, 24)
_S_OFF = BOTTLE + CLASSES      # softmax           at lanes [24, 32)


# ------------------------------ kernel ------------------------------------- #

def _fused_kernel(x_ref, wc_ref, bc_ref, wt_ref, bt_ref, out_ref):
    # x:  (tb, C_IN*HW) VMEM     wc: (C_IN, FEAT) SMEM (norm folded in)
    # bc: (1, FEAT) SMEM         wt: (FEAT, TAIL) VMEM   bt: (1, TAIL) VMEM
    # out: (tb, OUT_LANES) packed [bottleneck | logits | softmax | zero pad]
    tb = x_ref.shape[0]

    # Only the clamp of InputNormalize remains; mean/std are folded into wc/bc.
    xs = [jnp.clip(x_ref[:, c * HW:(c + 1) * HW], 0.0, 1.0) for c in range(C_IN)]

    # 1x1-conv backbone + ReLU + global average pool, one output feature at a
    # time: pure vector*scalar FMAs (VPU) + a 256-lane reduce (XLU).  No
    # (tb, FEAT, HW) intermediate ever materialises.
    cols = []
    for f in range(FEAT):
        hf = xs[0] * wc_ref[0, f]
        for c in range(1, C_IN):
            hf = hf + xs[c] * wc_ref[c, f]
        hf = jnp.maximum(hf + bc_ref[0, f], 0.0)          # (tb, HW)
        cols.append(jnp.mean(hf, axis=-1, keepdims=True))  # (tb, 1)
    feat = jnp.concatenate(cols, axis=-1)                   # (tb, FEAT)

    # Merged bottleneck|fc matmul: zy[:, :16] = z, zy[:, 16:24] = logits.
    zy = jnp.dot(feat, wt_ref[...],
                 preferred_element_type=jnp.float32) + bt_ref[...]   # (tb, TAIL)

    # Softmax(dim=1) with the divide on the EUP (approx reciprocal).
    y = zy[:, BOTTLE:]
    m = jnp.max(y, axis=-1, keepdims=True)
    e = jnp.exp(y - m)
    s = e * pl.reciprocal(jnp.sum(e, axis=-1, keepdims=True), approx=True)

    # One full-width, unmasked 128-lane store of the packed slab.
    pad = jnp.zeros((tb, OUT_LANES - TAIL - CLASSES), jnp.float32)
    out_ref[...] = jnp.concatenate([zy, s, pad], axis=-1)


# ------------------------------ wrapper ------------------------------------ #

def _fold_params(p):
    """Host-side glue: fold InputNormalize into the conv and merge the tail."""
    inv_std = 1.0 / p["std"]                                            # (C_IN,)
    wc = p["w_conv"] * inv_std[:, None]                                 # (C_IN, FEAT)
    bc = p["b_conv"] - (p["w_conv"] * (inv_std * p["mean"])[:, None]).sum(axis=0)
    w_tail = jnp.concatenate([p["wb_t"], p["wb_t"] @ p["wf_t"]], axis=1)  # (FEAT, TAIL)
    b_tail = jnp.concatenate([p["bb"], p["bb"] @ p["wf_t"] + p["bf"]])    # (TAIL,)
    return (wc.astype(jnp.float32),
            bc.reshape(1, FEAT).astype(jnp.float32),
            w_tail.astype(jnp.float32),
            b_tail.reshape(1, TAIL).astype(jnp.float32))


def _fused_forward(params, x_nchw):
    n = x_nchw.shape[0]
    x = x_nchw.reshape(n, C_IN * HW).astype(jnp.float32)   # dense (N, 768) layout

    tb = min(TB_MAX, pl.cdiv(n, 8) * 8)                    # batch block (multiple of 8)
    n_pad = pl.cdiv(n, tb) * tb
    if n_pad != n:
        x = jnp.pad(x, ((0, n_pad - n), (0, 0)))
    nb = n_pad // tb

    wc, bc, w_tail, b_tail = _fold_params(params)

    slab = pl.pallas_call(
        _fused_kernel,
        out_shape=jax.ShapeDtypeStruct((n_pad, OUT_LANES), jnp.float32),
        grid_spec=pltpu.PrefetchScalarGridSpec(
            num_scalar_prefetch=0,
            grid=(nb,),
            in_specs=[
                pl.BlockSpec((tb, C_IN * HW), lambda i: (i, 0)),
                # small scalar weight tables live in SMEM (cheap scalar reads)
                pl.BlockSpec(memory_space=pltpu.MemorySpace.SMEM),
                pl.BlockSpec(memory_space=pltpu.MemorySpace.SMEM),
                # VMEM-resident merged tail weights (constant block index)
                pl.BlockSpec((FEAT, TAIL), lambda i: (0, 0)),
                pl.BlockSpec((1, TAIL), lambda i: (0, 0)),
            ],
            out_specs=pl.BlockSpec((tb, OUT_LANES), lambda i: (i, 0)),
        ),
        compiler_params=pltpu.CompilerParams(
            dimension_semantics=("parallel",)),   # batch blocks shard across TCs (v7x)
    )(x, wc, bc, w_tail, b_tail)
    return slab[:n]


def new_resnet_fc_forward(params, inputs, multi_outputs=False):
    slab = _fused_forward(params, inputs)
    features = slab[:, _B_OFF:_B_OFF + BOTTLE]
    outputs = slab[:, _Y_OFF:_Y_OFF + CLASSES]
    if multi_outputs:
        softmax_outputs = slab[:, _S_OFF:_S_OFF + CLASSES]
        return features, outputs, softmax_outputs
    return outputs


# ------------------------------ params ------------------------------------- #

def init_params(key):
    ks = jax.random.split(key, 6)
    mean = jnp.array([0.485, 0.456, 0.406], jnp.float32)
    std = jnp.array([0.229, 0.224, 0.225], jnp.float32)
    w_conv = jax.random.normal(ks[0], (C_IN, FEAT), jnp.float32) * 0.1
    b_conv = jax.random.normal(ks[1], (FEAT,), jnp.float32) * 0.01
    # torch Linear weights are (out, in); pre-transposed here (glue, not kernel)
    wb_t = jax.random.normal(ks[2], (FEAT, BOTTLE), jnp.float32) * 0.05
    bb = jax.random.normal(ks[3], (BOTTLE,), jnp.float32) * 0.01
    wf_t = jax.random.normal(ks[4], (BOTTLE, CLASSES), jnp.float32) * 0.05
    bf = jax.random.normal(ks[5], (CLASSES,), jnp.float32) * 0.01
    return dict(mean=mean, std=std, w_conv=w_conv, b_conv=b_conv,
                wb_t=wb_t, bb=bb, wf_t=wf_t, bf=bf)


# ------------------------------ reference ---------------------------------- #

def _reference_forward(params, inputs):
    n = inputs.shape[0]
    x = jnp.clip(inputs.reshape(n, C_IN, HW).astype(jnp.float32), 0.0, 1.0)
    xn = (x - params["mean"][None, :, None]) / params["std"][None, :, None]
    h = jnp.einsum("ncp,cf->nfp", xn, params["w_conv"]) + params["b_conv"][None, :, None]
    h = jnp.maximum(h, 0.0)
    feat = jnp.mean(h, axis=-1)                              # (n, FEAT)
    z = feat @ params["wb_t"] + params["bb"]
    y = z @ params["wf_t"] + params["bf"]
    return z, y, jax.nn.softmax(y, axis=1)


# -------------------------------- main -------------------------------------- #

if __name__ == "__main__":
    key = jax.random.PRNGKey(0)
    k_params, k_x, k_x2 = jax.random.split(key, 3)
    params = init_params(k_params)

    # inputs: NCHW image batch in [0, 1]
    x = jax.random.uniform(k_x, (2, C_IN, H, W), jnp.float32)

    features, outputs, softmax_outputs = new_resnet_fc_forward(
        params, x, multi_outputs=True)
    outputs_only = new_resnet_fc_forward(params, x, multi_outputs=False)
    jax.block_until_ready((features, outputs, softmax_outputs, outputs_only))

    assert features.shape == (2, BOTTLE)
    assert outputs.shape == (2, CLASSES)
    assert softmax_outputs.shape == (2, CLASSES)
    # approx EUP reciprocal perturbs the softmax sum slightly -> relaxed atol
    assert jnp.allclose(jnp.sum(softmax_outputs, axis=1), 1.0, atol=5e-3)
    assert jnp.allclose(outputs_only, outputs, atol=1e-5)

    z_ref, y_ref, s_ref = _reference_forward(params, x)
    assert jnp.allclose(features, z_ref, atol=1e-3, rtol=1e-3)
    assert jnp.allclose(outputs, y_ref, atol=1e-3, rtol=1e-3)
    assert jnp.allclose(softmax_outputs, s_ref, atol=1e-3, rtol=1e-3)

    # Multi-block / padded path: tb = TB_MAX, several grid steps, odd batch.
    x_big = jax.random.uniform(k_x2, (2 * TB_MAX + 2, C_IN, H, W), jnp.float32)
    f_b, o_b, s_b = new_resnet_fc_forward(params, x_big, multi_outputs=True)
    jax.block_until_ready((f_b, o_b, s_b))
    z_rb, y_rb, s_rb = _reference_forward(params, x_big)
    assert jnp.allclose(f_b, z_rb, atol=1e-3, rtol=1e-3)
    assert jnp.allclose(o_b, y_rb, atol=1e-3, rtol=1e-3)
    assert jnp.allclose(s_b, s_rb, atol=1e-3, rtol=1e-3)

    print("KERNEL_OK")
</pallas_src>

<mosaic_0001>
module attributes {stable_mosaic.version = 11 : i64} {
  func.func @_fused_kernel(%arg0: i32, %arg1: memref<8x768xf32, #tpu.memory_space<vmem>>, %arg2: memref<3x32xf32, #tpu.memory_space<smem>>, %arg3: memref<1x32xf32, #tpu.memory_space<smem>>, %arg4: memref<32x24xf32, #tpu.memory_space<vmem>>, %arg5: memref<1x24xf32, #tpu.memory_space<vmem>>, %arg6: memref<8x128xf32, #tpu.memory_space<vmem>>) attributes {dimension_semantics = [#tpu.dimension_semantics<parallel>], iteration_bounds = array<i64: 1>, scalar_prefetch = 0 : i64, scratch_operands = 0 : i64, tpu.core_type = #tpu.core_type<tc>, window_params = [{transform_indices = @transform_0, window_bounds = array<i64: 8, 768>}, {transform_indices = @transform_1, window_bounds = array<i64: 3, 32>}, {transform_indices = @transform_2, window_bounds = array<i64: 1, 32>}, {pipeline_mode = #tpu.pipeline_mode<synchronous>, transform_indices = @transform_3, window_bounds = array<i64: 32, 24>}, {pipeline_mode = #tpu.pipeline_mode<synchronous>, transform_indices = @transform_4, window_bounds = array<i64: 1, 24>}, {transform_indices = @transform_5, window_bounds = array<i64: 8, 128>}]} {
    %c0 = arith.constant 0 : index
    %c0_0 = arith.constant 0 : index
    %0 = vector.load %arg1[%c0, %c0_0] : memref<8x768xf32, #tpu.memory_space<vmem>>, vector<8x256xf32>
    %cst = arith.constant 0.000000e+00 : f32
    %cst_1 = arith.constant 1.000000e+00 : f32
    %1 = vector.broadcast %cst : f32 to vector<8x256xf32>
    %2 = arith.maximumf %1, %0 : vector<8x256xf32>
    %3 = vector.broadcast %cst_1 : f32 to vector<8x256xf32>
    %4 = arith.minimumf %3, %2 : vector<8x256xf32>
    %c0_2 = arith.constant 0 : index
    %c256 = arith.constant 256 : index
    %5 = vector.load %arg1[%c0_2, %c256] : memref<8x768xf32, #tpu.memory_space<vmem>>, vector<8x256xf32>
    %cst_3 = arith.constant 0.000000e+00 : f32
    %cst_4 = arith.constant 1.000000e+00 : f32
    %6 = vector.broadcast %cst_3 : f32 to vector<8x256xf32>
    %7 = arith.maximumf %6, %5 : vector<8x256xf32>
    %8 = vector.broadcast %cst_4 : f32 to vector<8x256xf32>
    %9 = arith.minimumf %8, %7 : vector<8x256xf32>
    %c0_5 = arith.constant 0 : index
    %c512 = arith.constant 512 : index
    %10 = vector.load %arg1[%c0_5, %c512] : memref<8x768xf32, #tpu.memory_space<vmem>>, vector<8x256xf32>
    %cst_6 = arith.constant 0.000000e+00 : f32
    %cst_7 = arith.constant 1.000000e+00 : f32
    %11 = vector.broadcast %cst_6 : f32 to vector<8x256xf32>
    %12 = arith.maximumf %11, %10 : vector<8x256xf32>
    %13 = vector.broadcast %cst_7 : f32 to vector<8x256xf32>
    %14 = arith.minimumf %13, %12 : vector<8x256xf32>
    %c0_8 = arith.constant 0 : index
    %c0_9 = arith.constant 0 : index
    %15 = memref.load %arg2[%c0_8, %c0_9] : memref<3x32xf32, #tpu.memory_space<smem>>
    %16 = vector.broadcast %15 : f32 to vector<8x256xf32>
    %17 = arith.mulf %4, %16 : vector<8x256xf32>
    %c1 = arith.constant 1 : index
    %c0_10 = arith.constant 0 : index
    %18 = memref.load %arg2[%c1, %c0_10] : memref<3x32xf32, #tpu.memory_space<smem>>
    %19 = vector.broadcast %18 : f32 to vector<8x256xf32>
    %20 = arith.mulf %9, %19 : vector<8x256xf32>
    %21 = arith.addf %17, %20 : vector<8x256xf32>
    %c2 = arith.constant 2 : index
    %c0_11 = arith.constant 0 : index
    %22 = memref.load %arg2[%c2, %c0_11] : memref<3x32xf32, #tpu.memory_space<smem>>
    %23 = vector.broadcast %22 : f32 to vector<8x256xf32>
    %24 = arith.mulf %14, %23 : vector<8x256xf32>
    %25 = arith.addf %21, %24 : vector<8x256xf32>
    %c0_12 = arith.constant 0 : index
    %c0_13 = arith.constant 0 : index
    %26 = memref.load %arg3[%c0_12, %c0_13] : memref<1x32xf32, #tpu.memory_space<smem>>
    %27 = vector.broadcast %26 : f32 to vector<8x256xf32>
    %28 = arith.addf %25, %27 : vector<8x256xf32>
    %cst_14 = arith.constant 0.000000e+00 : f32
    %29 = vector.broadcast %cst_14 : f32 to vector<8x256xf32>
    %30 = arith.maximumf %28, %29 : vector<8x256xf32>
    %cst_15 = arith.constant dense<0.000000e+00> : vector<8xf32>
    %31 = vector.multi_reduction <add>, %30, %cst_15 [1] : vector<8x256xf32> to vector<8xf32>
    %32 = vector.shape_cast %31 : vector<8xf32> to vector<8x1xf32>
    %cst_16 = arith.constant 2.560000e+02 : f32
    %33 = vector.broadcast %cst_16 : f32 to vector<8x1xf32>
    %34 = arith.divf %32, %33 : vector<8x1xf32>
    %c0_17 = arith.constant 0 : index
    %c1_18 = arith.constant 1 : index
    %35 = memref.load %arg2[%c0_17, %c1_18] : memref<3x32xf32, #tpu.memory_space<smem>>
    %36 = vector.broadcast %35 : f32 to vector<8x256xf32>
    %37 = arith.mulf %4, %36 : vector<8x256xf32>
    %c1_19 = arith.constant 1 : index
    %c1_20 = arith.constant 1 : index
    %38 = memref.load %arg2[%c1_19, %c1_20] : memref<3x32xf32, #tpu.memory_space<smem>>
    %39 = vector.broadcast %38 : f32 to vector<8x256xf32>
    %40 = arith.mulf %9, %39 : vector<8x256xf32>
    %41 = arith.addf %37, %40 : vector<8x256xf32>
    %c2_21 = arith.constant 2 : index
    %c1_22 = arith.constant 1 : index
    %42 = memref.load %arg2[%c2_21, %c1_22] : memref<3x32xf32, #tpu.memory_space<smem>>
    %43 = vector.broadcast %42 : f32 to vector<8x256xf32>
    %44 = arith.mulf %14, %43 : vector<8x256xf32>
    %45 = arith.addf %41, %44 : vector<8x256xf32>
    %c0_23 = arith.constant 0 : index
    %c1_24 = arith.constant 1 : index
    %46 = memref.load %arg3[%c0_23, %c1_24] : memref<1x32xf32, #tpu.memory_space<smem>>
    %47 = vector.broadcast %46 : f32 to vector<8x256xf32>
    %48 = arith.addf %45, %47 : vector<8x256xf32>
    %cst_25 = arith.constant 0.000000e+00 : f32
    %49 = vector.broadcast %cst_25 : f32 to vector<8x256xf32>
    %50 = arith.maximumf %48, %49 : vector<8x256xf32>
    %cst_26 = arith.constant dense<0.000000e+00> : vector<8xf32>
    %51 = vector.multi_reduction <add>, %50, %cst_26 [1] : vector<8x256xf32> to vector<8xf32>
    %52 = vector.shape_cast %51 : vector<8xf32> to vector<8x1xf32>
    %cst_27 = arith.constant 2.560000e+02 : f32
    %53 = vector.broadcast %cst_27 : f32 to vector<8x1xf32>
    %54 = arith.divf %52, %53 : vector<8x1xf32>
    %c0_28 = arith.constant 0 : index
    %c2_29 = arith.constant 2 : index
    %55 = memref.load %arg2[%c0_28, %c2_29] : memref<3x32xf32, #tpu.memory_space<smem>>
    %56 = vector.broadcast %55 : f32 to vector<8x256xf32>
    %57 = arith.mulf %4, %56 : vector<8x256xf32>
    %c1_30 = arith.constant 1 : index
    %c2_31 = arith.constant 2 : index
    %58 = memref.load %arg2[%c1_30, %c2_31] : memref<3x32xf32, #tpu.memory_space<smem>>
    %59 = vector.broadcast %58 : f32 to vector<8x256xf32>
    %60 = arith.mulf %9, %59 : vector<8x256xf32>
    %61 = arith.addf %57, %60 : vector<8x256xf32>
    %c2_32 = arith.constant 2 : index
    %c2_33 = arith.constant 2 : index
    %62 = memref.load %arg2[%c2_32, %c2_33] : memref<3x32xf32, #tpu.memory_space<smem>>
    %63 = vector.broadcast %62 : f32 to vector<8x256xf32>
    %64 = arith.mulf %14, %63 : vector<8x256xf32>
    %65 = arith.addf %61, %64 : vector<8x256xf32>
    %c0_34 = arith.constant 0 : index
    %c2_35 = arith.constant 2 : index
    %66 = memref.load %arg3[%c0_34, %c2_35] : memref<1x32xf32, #tpu.memory_space<smem>>
    %67 = vector.broadcast %66 : f32 to vector<8x256xf32>
    %68 = arith.addf %65, %67 : vector<8x256xf32>
    %cst_36 = arith.constant 0.000000e+00 : f32
    %69 = vector.broadcast %cst_36 : f32 to vector<8x256xf32>
    %70 = arith.maximumf %68, %69 : vector<8x256xf32>
    %cst_37 = arith.constant dense<0.000000e+00> : vector<8xf32>
    %71 = vector.multi_reduction <add>, %70, %cst_37 [1] : vector<8x256xf32> to vector<8xf32>
    %72 = vector.shape_cast %71 : vector<8xf32> to vector<8x1xf32>
    %cst_38 = arith.constant 2.560000e+02 : f32
    %73 = vector.broadcast %cst_38 : f32 to vector<8x1xf32>
    %74 = arith.divf %72, %73 : vector<8x1xf32>
    %c0_39 = arith.constant 0 : index
    %c3 = arith.constant 3 : index
    %75 = memref.load %arg2[%c0_39, %c3] : memref<3x32xf32, #tpu.memory_space<smem>>
    %76 = vector.broadcast %75 : f32 to vector<8x256xf32>
    %77 = arith.mulf %4, %76 : vector<8x256xf32>
    %c1_40 = arith.constant 1 : index
    %c3_41 = arith.constant 3 : index
    %78 = memref.load %arg2[%c1_40, %c3_41] : memref<3x32xf32, #tpu.memory_space<smem>>
    %79 = vector.broadcast %78 : f32 to vector<8x256xf32>
    %80 = arith.mulf %9, %79 : vector<8x256xf32>
    %81 = arith.addf %77, %80 : vector<8x256xf32>
    %c2_42 = arith.constant 2 : index
    %c3_43 = arith.constant 3 : index
    %82 = memref.load %arg2[%c2_42, %c3_43] : memref<3x32xf32, #tpu.memory_space<smem>>
    %83 = vector.broadcast %82 : f32 to vector<8x256xf32>
    %84 = arith.mulf %14, %83 : vector<8x256xf32>
    %85 = arith.addf %81, %84 : vector<8x256xf32>
    %c0_44 = arith.constant 0 : index
    %c3_45 = arith.constant 3 : index
    %86 = memref.load %arg3[%c0_44, %c3_45] : memref<1x32xf32, #tpu.memory_space<smem>>
    %87 = vector.broadcast %86 : f32 to vector<8x256xf32>
    %88 = arith.addf %85, %87 : vector<8x256xf32>
    %cst_46 = arith.constant 0.000000e+00 : f32
    %89 = vector.broadcast %cst_46 : f32 to vector<8x256xf32>
    %90 = arith.maximumf %88, %89 : vector<8x256xf32>
    %cst_47 = arith.constant dense<0.000000e+00> : vector<8xf32>
    %91 = vector.multi_reduction <add>, %90, %cst_47 [1] : vector<8x256xf32> to vector<8xf32>
    %92 = vector.shape_cast %91 : vector<8xf32> to vector<8x1xf32>
    %cst_48 = arith.constant 2.560000e+02 : f32
    %93 = vector.broadcast %cst_48 : f32 to vector<8x1xf32>
    %94 = arith.divf %92, %93 : vector<8x1xf32>
    %c0_49 = arith.constant 0 : index
    %c4 = arith.constant 4 : index
    %95 = memref.load %arg2[%c0_49, %c4] : memref<3x32xf32, #tpu.memory_space<smem>>
    %96 = vector.broadcast %95 : f32 to vector<8x256xf32>
    %97 = arith.mulf %4, %96 : vector<8x256xf32>
    %c1_50 = arith.constant 1 : index
    %c4_51 = arith.constant 4 : index
    %98 = memref.load %arg2[%c1_50, %c4_51] : memref<3x32xf32, #tpu.memory_space<smem>>
    %99 = vector.broadcast %98 : f32 to vector<8x256xf32>
    %100 = arith.mulf %9, %99 : vector<8x256xf32>
    %101 = arith.addf %97, %100 : vector<8x256xf32>
    %c2_52 = arith.constant 2 : index
    %c4_53 = arith.constant 4 : index
    %102 = memref.load %arg2[%c2_52, %c4_53] : memref<3x32xf32, #tpu.memory_space<smem>>
    %103 = vector.broadcast %102 : f32 to vector<8x256xf32>
    %104 = arith.mulf %14, %103 : vector<8x256xf32>
    %105 = arith.addf %101, %104 : vector<8x256xf32>
    %c0_54 = arith.constant 0 : index
    %c4_55 = arith.constant 4 : index
    %106 = memref.load %arg3[%c0_54, %c4_55] : memref<1x32xf32, #tpu.memory_space<smem>>
    %107 = vector.broadcast %106 : f32 to vector<8x256xf32>
    %108 = arith.addf %105, %107 : vector<8x256xf32>
    %cst_56 = arith.constant 0.000000e+00 : f32
    %109 = vector.broadcast %cst_56 : f32 to vector<8x256xf32>
    %110 = arith.maximumf %108, %109 : vector<8x256xf32>
    %cst_57 = arith.constant dense<0.000000e+00> : vector<8xf32>
    %111 = vector.multi_reduction <add>, %110, %cst_57 [1] : vector<8x256xf32> to vector<8xf32>
    %112 = vector.shape_cast %111 : vector<8xf32> to vector<8x1xf32>
    %cst_58 = arith.constant 2.560000e+02 : f32
    %113 = vector.broadcast %cst_58 : f32 to vector<8x1xf32>
    %114 = arith.divf %112, %113 : vector<8x1xf32>
    %c0_59 = arith.constant 0 : index
    %c5 = arith.constant 5 : index
    %115 = memref.load %arg2[%c0_59, %c5] : memref<3x32xf32, #tpu.memory_space<smem>>
    %116 = vector.broadcast %115 : f32 to vector<8x256xf32>
    %117 = arith.mulf %4, %116 : vector<8x256xf32>
    %c1_60 = arith.constant 1 : index
    %c5_61 = arith.constant 5 : index
    %118 = memref.load %arg2[%c1_60, %c5_61] : memref<3x32xf32, #tpu.memory_space<smem>>
    %119 = vector.broadcast %118 : f32 to vector<8x256xf32>
    %120 = arith.mulf %9, %119 : vector<8x256xf32>
    %121 = arith.addf %117, %120 : vector<8x256xf32>
    %c2_62 = arith.constant 2 : index
    %c5_63 = arith.constant 5 : index
    %122 = memref.load %arg2[%c2_62, %c5_63] : memref<3x32xf32, #tpu.memory_space<smem>>
    %123 = vector.broadcast %122 : f32 to vector<8x256xf32>
    %124 = arith.mulf %14, %123 : vector<8x256xf32>
    %125 = arith.addf %121, %124 : vector<8x256xf32>
    %c0_64 = arith.constant 0 : index
    %c5_65 = arith.constant 5 : index
    %126 = memref.load %arg3[%c0_64, %c5_65] : memref<1x32xf32, #tpu.memory_space<smem>>
    %127 = vector.broadcast %126 : f32 to vector<8x256xf32>
    %128 = arith.addf %125, %127 : vector<8x256xf32>
    %cst_66 = arith.constant 0.000000e+00 : f32
    %129 = vector.broadcast %cst_66 : f32 to vector<8x256xf32>
    %130 = arith.maximumf %128, %129 : vector<8x256xf32>
    %cst_67 = arith.constant dense<0.000000e+00> : vector<8xf32>
    %131 = vector.multi_reduction <add>, %130, %cst_67 [1] : vector<8x256xf32> to vector<8xf32>
    %132 = vector.shape_cast %131 : vector<8xf32> to vector<8x1xf32>
    %cst_68 = arith.constant 2.560000e+02 : f32
    %133 = vector.broadcast %cst_68 : f32 to vector<8x1xf32>
    %134 = arith.divf %132, %133 : vector<8x1xf32>
    %c0_69 = arith.constant 0 : index
    %c6 = arith.constant 6 : index
    %135 = memref.load %arg2[%c0_69, %c6] : memref<3x32xf32, #tpu.memory_space<smem>>
    %136 = vector.broadcast %135 : f32 to vector<8x256xf32>
    %137 = arith.mulf %4, %136 : vector<8x256xf32>
    %c1_70 = arith.constant 1 : index
    %c6_71 = arith.constant 6 : index
    %138 = memref.load %arg2[%c1_70, %c6_71] : memref<3x32xf32, #tpu.memory_space<smem>>
    %139 = vector.broadcast %138 : f32 to vector<8x256xf32>
    %140 = arith.mulf %9, %139 : vector<8x256xf32>
    %141 = arith.addf %137, %140 : vector<8x256xf32>
    %c2_72 = arith.constant 2 : index
    %c6_73 = arith.constant 6 : index
    %142 = memref.load %arg2[%c2_72, %c6_73] : memref<3x32xf32, #tpu.memory_space<smem>>
    %143 = vector.broadcast %142 : f32 to vector<8x256xf32>
    %144 = arith.mulf %14, %143 : vector<8x256xf32>
    %145 = arith.addf %141, %144 : vector<8x256xf32>
    %c0_74 = arith.constant 0 : index
    %c6_75 = arith.constant 6 : index
    %146 = memref.load %arg3[%c0_74, %c6_75] : memref<1x32xf32, #tpu.memory_space<smem>>
    %147 = vector.broadcast %146 : f32 to vector<8x256xf32>
    %148 = arith.addf %145, %147 : vector<8x256xf32>
    %cst_76 = arith.constant 0.000000e+00 : f32
    %149 = vector.broadcast %cst_76 : f32 to vector<8x256xf32>
    %150 = arith.maximumf %148, %149 : vector<8x256xf32>
    %cst_77 = arith.constant dense<0.000000e+00> : vector<8xf32>
    %151 = vector.multi_reduction <add>, %150, %cst_77 [1] : vector<8x256xf32> to vector<8xf32>
    %152 = vector.shape_cast %151 : vector<8xf32> to vector<8x1xf32>
    %cst_78 = arith.constant 2.560000e+02 : f32
    %153 = vector.broadcast %cst_78 : f32 to vector<8x1xf32>
    %154 = arith.divf %152, %153 : vector<8x1xf32>
    %c0_79 = arith.constant 0 : index
    %c7 = arith.constant 7 : index
    %155 = memref.load %arg2[%c0_79, %c7] : memref<3x32xf32, #tpu.memory_space<smem>>
    %156 = vector.broadcast %155 : f32 to vector<8x256xf32>
    %157 = arith.mulf %4, %156 : vector<8x256xf32>
    %c1_80 = arith.constant 1 : index
    %c7_81 = arith.constant 7 : index
    %158 = memref.load %arg2[%c1_80, %c7_81] : memref<3x32xf32, #tpu.memory_space<smem>>
    %159 = vector.broadcast %158 : f32 to vector<8x256xf32>
    %160 = arith.mulf %9, %159 : vector<8x256xf32>
    %161 = arith.addf %157, %160 : vector<8x256xf32>
    %c2_82 = arith.constant 2 : index
    %c7_83 = arith.constant 7 : index
    %162 = memref.load %arg2[%c2_82, %c7_83] : memref<3x32xf32, #tpu.memory_space<smem>>
    %163 = vector.broadcast %162 : f32 to vector<8x256xf32>
    %164 = arith.mulf %14, %163 : vector<8x256xf32>
    %165 = arith.addf %161, %164 : vector<8x256xf32>
    %c0_84 = arith.constant 0 : index
    %c7_85 = arith.constant 7 : index
    %166 = memref.load %arg3[%c0_84, %c7_85] : memref<1x32xf32, #tpu.memory_space<smem>>
    %167 = vector.broadcast %166 : f32 to vector<8x256xf32>
    %168 = arith.addf %165, %167 : vector<8x256xf32>
    %cst_86 = arith.constant 0.000000e+00 : f32
    %169 = vector.broadcast %cst_86 : f32 to vector<8x256xf32>
    %170 = arith.maximumf %168, %169 : vector<8x256xf32>
    %cst_87 = arith.constant dense<0.000000e+00> : vector<8xf32>
    %171 = vector.multi_reduction <add>, %170, %cst_87 [1] : vector<8x256xf32> to vector<8xf32>
    %172 = vector.shape_cast %171 : vector<8xf32> to vector<8x1xf32>
    %cst_88 = arith.constant 2.560000e+02 : f32
    %173 = vector.broadcast %cst_88 : f32 to vector<8x1xf32>
    %174 = arith.divf %172, %173 : vector<8x1xf32>
    %c0_89 = arith.constant 0 : index
    %c8 = arith.constant 8 : index
    %175 = memref.load %arg2[%c0_89, %c8] : memref<3x32xf32, #tpu.memory_space<smem>>
    %176 = vector.broadcast %175 : f32 to vector<8x256xf32>
    %177 = arith.mulf %4, %176 : vector<8x256xf32>
    %c1_90 = arith.constant 1 : index
    %c8_91 = arith.constant 8 : index
    %178 = memref.load %arg2[%c1_90, %c8_91] : memref<3x32xf32, #tpu.memory_space<smem>>
    %179 = vector.broadcast %178 : f32 to vector<8x256xf32>
    %180 = arith.mulf %9, %179 : vector<8x256xf32>
    %181 = arith.addf %177, %180 : vector<8x256xf32>
    %c2_92 = arith.constant 2 : index
    %c8_93 = arith.constant 8 : index
    %182 = memref.load %arg2[%c2_92, %c8_93] : memref<3x32xf32, #tpu.memory_space<smem>>
    %183 = vector.broadcast %182 : f32 to vector<8x256xf32>
    %184 = arith.mulf %14, %183 : vector<8x256xf32>
    %185 = arith.addf %181, %184 : vector<8x256xf32>
    %c0_94 = arith.constant 0 : index
    %c8_95 = arith.constant 8 : index
    %186 = memref.load %arg3[%c0_94, %c8_95] : memref<1x32xf32, #tpu.memory_space<smem>>
    %187 = vector.broadcast %186 : f32 to vector<8x256xf32>
    %188 = arith.addf %185, %187 : vector<8x256xf32>
    %cst_96 = arith.constant 0.000000e+00 : f32
    %189 = vector.broadcast %cst_96 : f32 to vector<8x256xf32>
    %190 = arith.maximumf %188, %189 : vector<8x256xf32>
    %cst_97 = arith.constant dense<0.000000e+00> : vector<8xf32>
    %191 = vector.multi_reduction <add>, %190, %cst_97 [1] : vector<8x256xf32> to vector<8xf32>
    %192 = vector.shape_cast %191 : vector<8xf32> to vector<8x1xf32>
    %cst_98 = arith.constant 2.560000e+02 : f32
    %193 = vector.broadcast %cst_98 : f32 to vector<8x1xf32>
    %194 = arith.divf %192, %193 : vector<8x1xf32>
    %c0_99 = arith.constant 0 : index
    %c9 = arith.constant 9 : index
    %195 = memref.load %arg2[%c0_99, %c9] : memref<3x32xf32, #tpu.memory_space<smem>>
    %196 = vector.broadcast %195 : f32 to vector<8x256xf32>
    %197 = arith.mulf %4, %196 : vector<8x256xf32>
    %c1_100 = arith.constant 1 : index
    %c9_101 = arith.constant 9 : index
    %198 = memref.load %arg2[%c1_100, %c9_101] : memref<3x32xf32, #tpu.memory_space<smem>>
    %199 = vector.broadcast %198 : f32 to vector<8x256xf32>
    %200 = arith.mulf %9, %199 : vector<8x256xf32>
    %201 = arith.addf %197, %200 : vector<8x256xf32>
    %c2_102 = arith.constant 2 : index
    %c9_103 = arith.constant 9 : index
    %202 = memref.load %arg2[%c2_102, %c9_103] : memref<3x32xf32, #tpu.memory_space<smem>>
    %203 = vector.broadcast %202 : f32 to vector<8x256xf32>
    %204 = arith.mulf %14, %203 : vector<8x256xf32>
    %205 = arith.addf %201, %204 : vector<8x256xf32>
    %c0_104 = arith.constant 0 : index
    %c9_105 = arith.constant 9 : index
    %206 = memref.load %arg3[%c0_104, %c9_105] : memref<1x32xf32, #tpu.memory_space<smem>>
    %207 = vector.broadcast %206 : f32 to vector<8x256xf32>
    %208 = arith.addf %205, %207 : vector<8x256xf32>
    %cst_106 = arith.constant 0.000000e+00 : f32
    %209 = vector.broadcast %cst_106 : f32 to vector<8x256xf32>
    %210 = arith.maximumf %208, %209 : vector<8x256xf32>
    %cst_107 = arith.constant dense<0.000000e+00> : vector<8xf32>
    %211 = vector.multi_reduction <add>, %210, %cst_107 [1] : vector<8x256xf32> to vector<8xf32>
    %212 = vector.shape_cast %211 : vector<8xf32> to vector<8x1xf32>
    %cst_108 = arith.constant 2.560000e+02 : f32
    %213 = vector.broadcast %cst_108 : f32 to vector<8x1xf32>
    %214 = arith.divf %212, %213 : vector<8x1xf32>
    %c0_109 = arith.constant 0 : index
    %c10 = arith.constant 10 : index
    %215 = memref.load %arg2[%c0_109, %c10] : memref<3x32xf32, #tpu.memory_space<smem>>
    %216 = vector.broadcast %215 : f32 to vector<8x256xf32>
    %217 = arith.mulf %4, %216 : vector<8x256xf32>
    %c1_110 = arith.constant 1 : index
    %c10_111 = arith.constant 10 : index
    %218 = memref.load %arg2[%c1_110, %c10_111] : memref<3x32xf32, #tpu.memory_space<smem>>
    %219 = vector.broadcast %218 : f32 to vector<8x256xf32>
    %220 = arith.mulf %9, %219 : vector<8x256xf32>
    %221 = arith.addf %217, %220 : vector<8x256xf32>
    %c2_112 = arith.constant 2 : index
    %c10_113 = arith.constant 10 : index
    %222 = memref.load %arg2[%c2_112, %c10_113] : memref<3x32xf32, #tpu.memory_space<smem>>
    %223 = vector.broadcast %222 : f32 to vector<8x256xf32>
    %224 = arith.mulf %14, %223 : vector<8x256xf32>
    %225 = arith.addf %221, %224 : vector<8x256xf32>
    %c0_114 = arith.constant 0 : index
    %c10_115 = arith.constant 10 : index
    %226 = memref.load %arg3[%c0_114, %c10_115] : memref<1x32xf32, #tpu.memory_space<smem>>
    %227 = vector.broadcast %226 : f32 to vector<8x256xf32>
    %228 = arith.addf %225, %227 : vector<8x256xf32>
    %cst_116 = arith.constant 0.000000e+00 : f32
    %229 = vector.broadcast %cst_116 : f32 to vector<8x256xf32>
    %230 = arith.maximumf %228, %229 : vector<8x256xf32>
    %cst_117 = arith.constant dense<0.000000e+00> : vector<8xf32>
    %231 = vector.multi_reduction <add>, %230, %cst_117 [1] : vector<8x256xf32> to vector<8xf32>
    %232 = vector.shape_cast %231 : vector<8xf32> to vector<8x1xf32>
    %cst_118 = arith.constant 2.560000e+02 : f32
    %233 = vector.broadcast %cst_118 : f32 to vector<8x1xf32>
    %234 = arith.divf %232, %233 : vector<8x1xf32>
    %c0_119 = arith.constant 0 : index
    %c11 = arith.constant 11 : index
    %235 = memref.load %arg2[%c0_119, %c11] : memref<3x32xf32, #tpu.memory_space<smem>>
    %236 = vector.broadcast %235 : f32 to vector<8x256xf32>
    %237 = arith.mulf %4, %236 : vector<8x256xf32>
    %c1_120 = arith.constant 1 : index
    %c11_121 = arith.constant 11 : index
    %238 = memref.load %arg2[%c1_120, %c11_121] : memref<3x32xf32, #tpu.memory_space<smem>>
    %239 = vector.broadcast %238 : f32 to vector<8x256xf32>
    %240 = arith.mulf %9, %239 : vector<8x256xf32>
    %241 = arith.addf %237, %240 : vector<8x256xf32>
    %c2_122 = arith.constant 2 : index
    %c11_123 = arith.constant 11 : index
    %242 = memref.load %arg2[%c2_122, %c11_123] : memref<3x32xf32, #tpu.memory_space<smem>>
    %243 = vector.broadcast %242 : f32 to vector<8x256xf32>
    %244 = arith.mulf %14, %243 : vector<8x256xf32>
    %245 = arith.addf %241, %244 : vector<8x256xf32>
    %c0_124 = arith.constant 0 : index
    %c11_125 = arith.constant 11 : index
    %246 = memref.load %arg3[%c0_124, %c11_125] : memref<1x32xf32, #tpu.memory_space<smem>>
    %247 = vector.broadcast %246 : f32 to vector<8x256xf32>
    %248 = arith.addf %245, %247 : vector<8x256xf32>
    %cst_126 = arith.constant 0.000000e+00 : f32
    %249 = vector.broadcast %cst_126 : f32 to vector<8x256xf32>
    %250 = arith.maximumf %248, %249 : vector<8x256xf32>
    %cst_127 = arith.constant dense<0.000000e+00> : vector<8xf32>
    %251 = vector.multi_reduction <add>, %250, %cst_127 [1] : vector<8x256xf32> to vector<8xf32>
    %252 = vector.shape_cast %251 : vector<8xf32> to vector<8x1xf32>
    %cst_128 = arith.constant 2.560000e+02 : f32
    %253 = vector.broadcast %cst_128 : f32 to vector<8x1xf32>
    %254 = arith.divf %252, %253 : vector<8x1xf32>
    %c0_129 = arith.constant 0 : index
    %c12 = arith.constant 12 : index
    %255 = memref.load %arg2[%c0_129, %c12] : memref<3x32xf32, #tpu.memory_space<smem>>
    %256 = vector.broadcast %255 : f32 to vector<8x256xf32>
    %257 = arith.mulf %4, %256 : vector<8x256xf32>
    %c1_130 = arith.constant 1 : index
    %c12_131 = arith.constant 12 : index
    %258 = memref.load %arg2[%c1_130, %c12_131] : memref<3x32xf32, #tpu.memory_space<smem>>
    %259 = vector.broadcast %258 : f32 to vector<8x256xf32>
    %260 = arith.mulf %9, %259 : vector<8x256xf32>
    %261 = arith.addf %257, %260 : vector<8x256xf32>
    %c2_132 = arith.constant 2 : index
    %c12_133 = arith.constant 12 : index
    %262 = memref.load %arg2[%c2_132, %c12_133] : memref<3x32xf32, #tpu.memory_space<smem>>
    %263 = vector.broadcast %262 : f32 to vector<8x256xf32>
    %264 = arith.mulf %14, %263 : vector<8x256xf32>
    %265 = arith.addf %261, %264 : vector<8x256xf32>
    %c0_134 = arith.constant 0 : index
    %c12_135 = arith.constant 12 : index
    %266 = memref.load %arg3[%c0_134, %c12_135] : memref<1x32xf32, #tpu.memory_space<smem>>
    %267 = vector.broadcast %266 : f32 to vector<8x256xf32>
    %268 = arith.addf %265, %267 : vector<8x256xf32>
    %cst_136 = arith.constant 0.000000e+00 : f32
    %269 = vector.broadcast %cst_136 : f32 to vector<8x256xf32>
    %270 = arith.maximumf %268, %269 : vector<8x256xf32>
    %cst_137 = arith.constant dense<0.000000e+00> : vector<8xf32>
    %271 = vector.multi_reduction <add>, %270, %cst_137 [1] : vector<8x256xf32> to vector<8xf32>
    %272 = vector.shape_cast %271 : vector<8xf32> to vector<8x1xf32>
    %cst_138 = arith.constant 2.560000e+02 : f32
    %273 = vector.broadcast %cst_138 : f32 to vector<8x1xf32>
    %274 = arith.divf %272, %273 : vector<8x1xf32>
    %c0_139 = arith.constant 0 : index
    %c13 = arith.constant 13 : index
    %275 = memref.load %arg2[%c0_139, %c13] : memref<3x32xf32, #tpu.memory_space<smem>>
    %276 = vector.broadcast %275 : f32 to vector<8x256xf32>
    %277 = arith.mulf %4, %276 : vector<8x256xf32>
    %c1_140 = arith.constant 1 : index
    %c13_141 = arith.constant 13 : index
    %278 = memref.load %arg2[%c1_140, %c13_141] : memref<3x32xf32, #tpu.memory_space<smem>>
    %279 = vector.broadcast %278 : f32 to vector<8x256xf32>
    %280 = arith.mulf %9, %279 : vector<8x256xf32>
    %281 = arith.addf %277, %280 : vector<8x256xf32>
    %c2_142 = arith.constant 2 : index
    %c13_143 = arith.constant 13 : index
    %282 = memref.load %arg2[%c2_142, %c13_143] : memref<3x32xf32, #tpu.memory_space<smem>>
    %283 = vector.broadcast %282 : f32 to vector<8x256xf32>
    %284 = arith.mulf %14, %283 : vector<8x256xf32>
    %285 = arith.addf %281, %284 : vector<8x256xf32>
    %c0_144 = arith.constant 0 : index
    %c13_145 = arith.constant 13 : index
    %286 = memref.load %arg3[%c0_144, %c13_145] : memref<1x32xf32, #tpu.memory_space<smem>>
    %287 = vector.broadcast %286 : f32 to vector<8x256xf32>
    %288 = arith.addf %285, %287 : vector<8x256xf32>
    %cst_146 = arith.constant 0.000000e+00 : f32
    %289 = vector.broadcast %cst_146 : f32 to vector<8x256xf32>
    %290 = arith.maximumf %288, %289 : vector<8x256xf32>
    %cst_147 = arith.constant dense<0.000000e+00> : vector<8xf32>
    %291 = vector.multi_reduction <add>, %290, %cst_147 [1] : vector<8x256xf32> to vector<8xf32>
    %292 = vector.shape_cast %291 : vector<8xf32> to vector<8x1xf32>
    %cst_148 = arith.constant 2.560000e+02 : f32
    %293 = vector.broadcast %cst_148 : f32 to vector<8x1xf32>
    %294 = arith.divf %292, %293 : vector<8x1xf32>
    %c0_149 = arith.constant 0 : index
    %c14 = arith.constant 14 : index
    %295 = memref.load %arg2[%c0_149, %c14] : memref<3x32xf32, #tpu.memory_space<smem>>
    %296 = vector.broadcast %295 : f32 to vector<8x256xf32>
    %297 = arith.mulf %4, %296 : vector<8x256xf32>
    %c1_150 = arith.constant 1 : index
    %c14_151 = arith.constant 14 : index
    %298 = memref.load %arg2[%c1_150, %c14_151] : memref<3x32xf32, #tpu.memory_space<smem>>
    %299 = vector.broadcast %298 : f32 to vector<8x256xf32>
    %300 = arith.mulf %9, %299 : vector<8x256xf32>
    %301 = arith.addf %297, %300 : vector<8x256xf32>
    %c2_152 = arith.constant 2 : index
    %c14_153 = arith.constant 14 : index
    %302 = memref.load %arg2[%c2_152, %c14_153] : memref<3x32xf32, #tpu.memory_space<smem>>
    %303 = vector.broadcast %302 : f32 to vector<8x256xf32>
    %304 = arith.mulf %14, %303 : vector<8x256xf32>
    %305 = arith.addf %301, %304 : vector<8x256xf32>
    %c0_154 = arith.constant 0 : index
    %c14_155 = arith.constant 14 : index
    %306 = memref.load %arg3[%c0_154, %c14_155] : memref<1x32xf32, #tpu.memory_space<smem>>
    %307 = vector.broadcast %306 : f32 to vector<8x256xf32>
    %308 = arith.addf %305, %307 : vector<8x256xf32>
    %cst_156 = arith.constant 0.000000e+00 : f32
    %309 = vector.broadcast %cst_156 : f32 to vector<8x256xf32>
    %310 = arith.maximumf %308, %309 : vector<8x256xf32>
    %cst_157 = arith.constant dense<0.000000e+00> : vector<8xf32>
    %311 = vector.multi_reduction <add>, %310, %cst_157 [1] : vector<8x256xf32> to vector<8xf32>
    %312 = vector.shape_cast %311 : vector<8xf32> to vector<8x1xf32>
    %cst_158 = arith.constant 2.560000e+02 : f32
    %313 = vector.broadcast %cst_158 : f32 to vector<8x1xf32>
    %314 = arith.divf %312, %313 : vector<8x1xf32>
    %c0_159 = arith.constant 0 : index
    %c15 = arith.constant 15 : index
    %315 = memref.load %arg2[%c0_159, %c15] : memref<3x32xf32, #tpu.memory_space<smem>>
    %316 = vector.broadcast %315 : f32 to vector<8x256xf32>
    %317 = arith.mulf %4, %316 : vector<8x256xf32>
    %c1_160 = arith.constant 1 : index
    %c15_161 = arith.constant 15 : index
    %318 = memref.load %arg2[%c1_160, %c15_161] : memref<3x32xf32, #tpu.memory_space<smem>>
    %319 = vector.broadcast %318 : f32 to vector<8x256xf32>
    %320 = arith.mulf %9, %319 : vector<8x256xf32>
    %321 = arith.addf %317, %320 : vector<8x256xf32>
    %c2_162 = arith.constant 2 : index
    %c15_163 = arith.constant 15 : index
    %322 = memref.load %arg2[%c2_162, %c15_163] : memref<3x32xf32, #tpu.memory_space<smem>>
    %323 = vector.broadcast %322 : f32 to vector<8x256xf32>
    %324 = arith.mulf %14, %323 : vector<8x256xf32>
    %325 = arith.addf %321, %324 : vector<8x256xf32>
    %c0_164 = arith.constant 0 : index
    %c15_165 = arith.constant 15 : index
    %326 = memref.load %arg3[%c0_164, %c15_165] : memref<1x32xf32, #tpu.memory_space<smem>>
    %327 = vector.broadcast %326 : f32 to vector<8x256xf32>
    %328 = arith.addf %325, %327 : vector<8x256xf32>
    %cst_166 = arith.constant 0.000000e+00 : f32
    %329 = vector.broadcast %cst_166 : f32 to vector<8x256xf32>
    %330 = arith.maximumf %328, %329 : vector<8x256xf32>
    %cst_167 = arith.constant dense<0.000000e+00> : vector<8xf32>
    %331 = vector.multi_reduction <add>, %330, %cst_167 [1] : vector<8x256xf32> to vector<8xf32>
    %332 = vector.shape_cast %331 : vector<8xf32> to vector<8x1xf32>
    %cst_168 = arith.constant 2.560000e+02 : f32
    %333 = vector.broadcast %cst_168 : f32 to vector<8x1xf32>
    %334 = arith.divf %332, %333 : vector<8x1xf32>
    %c0_169 = arith.constant 0 : index
    %c16 = arith.constant 16 : index
    %335 = memref.load %arg2[%c0_169, %c16] : memref<3x32xf32, #tpu.memory_space<smem>>
    %336 = vector.broadcast %335 : f32 to vector<8x256xf32>
    %337 = arith.mulf %4, %336 : vector<8x256xf32>
    %c1_170 = arith.constant 1 : index
    %c16_171 = arith.constant 16 : index
    %338 = memref.load %arg2[%c1_170, %c16_171] : memref<3x32xf32, #tpu.memory_space<smem>>
    %339 = vector.broadcast %338 : f32 to vector<8x256xf32>
    %340 = arith.mulf %9, %339 : vector<8x256xf32>
    %341 = arith.addf %337, %340 : vector<8x256xf32>
    %c2_172 = arith.constant 2 : index
    %c16_173 = arith.constant 16 : index
    %342 = memref.load %arg2[%c2_172, %c16_173] : memref<3x32xf32, #tpu.memory_space<smem>>
    %343 = vector.broadcast %342 : f32 to vector<8x256xf32>
    %344 = arith.mulf %14, %343 : vector<8x256xf32>
    %345 = arith.addf %341, %344 : vector<8x256xf32>
    %c0_174 = arith.constant 0 : index
    %c16_175 = arith.constant 16 : index
    %346 = memref.load %arg3[%c0_174, %c16_175] : memref<1x32xf32, #tpu.memory_space<smem>>
    %347 = vector.broadcast %346 : f32 to vector<8x256xf32>
    %348 = arith.addf %345, %347 : vector<8x256xf32>
    %cst_176 = arith.constant 0.000000e+00 : f32
    %349 = vector.broadcast %cst_176 : f32 to vector<8x256xf32>
    %350 = arith.maximumf %348, %349 : vector<8x256xf32>
    %cst_177 = arith.constant dense<0.000000e+00> : vector<8xf32>
    %351 = vector.multi_reduction <add>, %350, %cst_177 [1] : vector<8x256xf32> to vector<8xf32>
    %352 = vector.shape_cast %351 : vector<8xf32> to vector<8x1xf32>
    %cst_178 = arith.constant 2.560000e+02 : f32
    %353 = vector.broadcast %cst_178 : f32 to vector<8x1xf32>
    %354 = arith.divf %352, %353 : vector<8x1xf32>
    %c0_179 = arith.constant 0 : index
    %c17 = arith.constant 17 : index
    %355 = memref.load %arg2[%c0_179, %c17] : memref<3x32xf32, #tpu.memory_space<smem>>
    %356 = vector.broadcast %355 : f32 to vector<8x256xf32>
    %357 = arith.mulf %4, %356 : vector<8x256xf32>
    %c1_180 = arith.constant 1 : index
    %c17_181 = arith.constant 17 : index
    %358 = memref.load %arg2[%c1_180, %c17_181] : memref<3x32xf32, #tpu.memory_space<smem>>
    %359 = vector.broadcast %358 : f32 to vector<8x256xf32>
    %360 = arith.mulf %9, %359 : vector<8x256xf32>
    %361 = arith.addf %357, %360 : vector<8x256xf32>
    %c2_182 = arith.constant 2 : index
    %c17_183 = arith.constant 17 : index
    %362 = memref.load %arg2[%c2_182, %c17_183] : memref<3x32xf32, #tpu.memory_space<smem>>
    %363 = vector.broadcast %362 : f32 to vector<8x256xf32>
    %364 = arith.mulf %14, %363 : vector<8x256xf32>
    %365 = arith.addf %361, %364 : vector<8x256xf32>
    %c0_184 = arith.constant 0 : index
    %c17_185 = arith.constant 17 : index
    %366 = memref.load %arg3[%c0_184, %c17_185] : memref<1x32xf32, #tpu.memory_space<smem>>
    %367 = vector.broadcast %366 : f32 to vector<8x256xf32>
    %368 = arith.addf %365, %367 : vector<8x256xf32>
    %cst_186 = arith.constant 0.000000e+00 : f32
    %369 = vector.broadcast %cst_186 : f32 to vector<8x256xf32>
    %370 = arith.maximumf %368, %369 : vector<8x256xf32>
    %cst_187 = arith.constant dense<0.000000e+00> : vector<8xf32>
    %371 = vector.multi_reduction <add>, %370, %cst_187 [1] : vector<8x256xf32> to vector<8xf32>
    %372 = vector.shape_cast %371 : vector<8xf32> to vector<8x1xf32>
    %cst_188 = arith.constant 2.560000e+02 : f32
    %373 = vector.broadcast %cst_188 : f32 to vector<8x1xf32>
    %374 = arith.divf %372, %373 : vector<8x1xf32>
    %c0_189 = arith.constant 0 : index
    %c18 = arith.constant 18 : index
    %375 = memref.load %arg2[%c0_189, %c18] : memref<3x32xf32, #tpu.memory_space<smem>>
    %376 = vector.broadcast %375 : f32 to vector<8x256xf32>
    %377 = arith.mulf %4, %376 : vector<8x256xf32>
    %c1_190 = arith.constant 1 : index
    %c18_191 = arith.constant 18 : index
    %378 = memref.load %arg2[%c1_190, %c18_191] : memref<3x32xf32, #tpu.memory_space<smem>>
    %379 = vector.broadcast %378 : f32 to vector<8x256xf32>
    %380 = arith.mulf %9, %379 : vector<8x256xf32>
    %381 = arith.addf %377, %380 : vector<8x256xf32>
    %c2_192 = arith.constant 2 : index
    %c18_193 = arith.constant 18 : index
    %382 = memref.load %arg2[%c2_192, %c18_193] : memref<3x32xf32, #tpu.memory_space<smem>>
    %383 = vector.broadcast %382 : f32 to vector<8x256xf32>
    %384 = arith.mulf %14, %383 : vector<8x256xf32>
    %385 = arith.addf %381, %384 : vector<8x256xf32>
    %c0_194 = arith.constant 0 : index
    %c18_195 = arith.constant 18 : index
    %386 = memref.load %arg3[%c0_194, %c18_195] : memref<1x32xf32, #tpu.memory_space<smem>>
    %387 = vector.broadcast %386 : f32 to vector<8x256xf32>
    %388 = arith.addf %385, %387 : vector<8x256xf32>
    %cst_196 = arith.constant 0.000000e+00 : f32
    %389 = vector.broadcast %cst_196 : f32 to vector<8x256xf32>
    %390 = arith.maximumf %388, %389 : vector<8x256xf32>
    %cst_197 = arith.constant dense<0.000000e+00> : vector<8xf32>
    %391 = vector.multi_reduction <add>, %390, %cst_197 [1] : vector<8x256xf32> to vector<8xf32>
    %392 = vector.shape_cast %391 : vector<8xf32> to vector<8x1xf32>
    %cst_198 = arith.constant 2.560000e+02 : f32
    %393 = vector.broadcast %cst_198 : f32 to vector<8x1xf32>
    %394 = arith.divf %392, %393 : vector<8x1xf32>
    %c0_199 = arith.constant 0 : index
    %c19 = arith.constant 19 : index
    %395 = memref.load %arg2[%c0_199, %c19] : memref<3x32xf32, #tpu.memory_space<smem>>
    %396 = vector.broadcast %395 : f32 to vector<8x256xf32>
    %397 = arith.mulf %4, %396 : vector<8x256xf32>
    %c1_200 = arith.constant 1 : index
    %c19_201 = arith.constant 19 : index
    %398 = memref.load %arg2[%c1_200, %c19_201] : memref<3x32xf32, #tpu.memory_space<smem>>
    %399 = vector.broadcast %398 : f32 to vector<8x256xf32>
    %400 = arith.mulf %9, %399 : vector<8x256xf32>
    %401 = arith.addf %397, %400 : vector<8x256xf32>
    %c2_202 = arith.constant 2 : index
    %c19_203 = arith.constant 19 : index
    %402 = memref.load %arg2[%c2_202, %c19_203] : memref<3x32xf32, #tpu.memory_space<smem>>
    %403 = vector.broadcast %402 : f32 to vector<8x256xf32>
    %404 = arith.mulf %14, %403 : vector<8x256xf32>
    %405 = arith.addf %401, %404 : vector<8x256xf32>
    %c0_204 = arith.constant 0 : index
    %c19_205 = arith.constant 19 : index
    %406 = memref.load %arg3[%c0_204, %c19_205] : memref<1x32xf32, #tpu.memory_space<smem>>
    %407 = vector.broadcast %406 : f32 to vector<8x256xf32>
    %408 = arith.addf %405, %407 : vector<8x256xf32>
    %cst_206 = arith.constant 0.000000e+00 : f32
    %409 = vector.broadcast %cst_206 : f32 to vector<8x256xf32>
    %410 = arith.maximumf %408, %409 : vector<8x256xf32>
    %cst_207 = arith.constant dense<0.000000e+00> : vector<8xf32>
    %411 = vector.multi_reduction <add>, %410, %cst_207 [1] : vector<8x256xf32> to vector<8xf32>
    %412 = vector.shape_cast %411 : vector<8xf32> to vector<8x1xf32>
    %cst_208 = arith.constant 2.560000e+02 : f32
    %413 = vector.broadcast %cst_208 : f32 to vector<8x1xf32>
    %414 = arith.divf %412, %413 : vector<8x1xf32>
    %c0_209 = arith.constant 0 : index
    %c20 = arith.constant 20 : index
    %415 = memref.load %arg2[%c0_209, %c20] : memref<3x32xf32, #tpu.memory_space<smem>>
    %416 = vector.broadcast %415 : f32 to vector<8x256xf32>
    %417 = arith.mulf %4, %416 : vector<8x256xf32>
    %c1_210 = arith.constant 1 : index
    %c20_211 = arith.constant 20 : index
    %418 = memref.load %arg2[%c1_210, %c20_211] : memref<3x32xf32, #tpu.memory_space<smem>>
    %419 = vector.broadcast %418 : f32 to vector<8x256xf32>
    %420 = arith.mulf %9, %419 : vector<8x256xf32>
    %421 = arith.addf %417, %420 : vector<8x256xf32>
    %c2_212 = arith.constant 2 : index
    %c20_213 = arith.constant 20 : index
    %422 = memref.load %arg2[%c2_212, %c20_213] : memref<3x32xf32, #tpu.memory_space<smem>>
    %423 = vector.broadcast %422 : f32 to vector<8x256xf32>
    %424 = arith.mulf %14, %423 : vector<8x256xf32>
    %425 = arith.addf %421, %424 : vector<8x256xf32>
    %c0_214 = arith.constant 0 : index
    %c20_215 = arith.constant 20 : index
    %426 = memref.load %arg3[%c0_214, %c20_215] : memref<1x32xf32, #tpu.memory_space<smem>>
    %427 = vector.broadcast %426 : f32 to vector<8x256xf32>
    %428 = arith.addf %425, %427 : vector<8x256xf32>
    %cst_216 = arith.constant 0.000000e+00 : f32
    %429 = vector.broadcast %cst_216 : f32 to vector<8x256xf32>
    %430 = arith.maximumf %428, %429 : vector<8x256xf32>
    %cst_217 = arith.constant dense<0.000000e+00> : vector<8xf32>
    %431 = vector.multi_reduction <add>, %430, %cst_217 [1] : vector<8x256xf32> to vector<8xf32>
    %432 = vector.shape_cast %431 : vector<8xf32> to vector<8x1xf32>
    %cst_218 = arith.constant 2.560000e+02 : f32
    %433 = vector.broadcast %cst_218 : f32 to vector<8x1xf32>
    %434 = arith.divf %432, %433 : vector<8x1xf32>
    %c0_219 = arith.constant 0 : index
    %c21 = arith.constant 21 : index
    %435 = memref.load %arg2[%c0_219, %c21] : memref<3x32xf32, #tpu.memory_space<smem>>
    %436 = vector.broadcast %435 : f32 to vector<8x256xf32>
    %437 = arith.mulf %4, %436 : vector<8x256xf32>
    %c1_220 = arith.constant 1 : index
    %c21_221 = arith.constant 21 : index
    %438 = memref.load %arg2[%c1_220, %c21_221] : memref<3x32xf32, #tpu.memory_space<smem>>
    %439 = vector.broadcast %438 : f32 to vector<8x256xf32>
    %440 = arith.mulf %9, %439 : vector<8x256xf32>
    %441 = arith.addf %437, %440 : vector<8x256xf32>
    %c2_222 = arith.constant 2 : index
    %c21_223 = arith.constant 21 : index
    %442 = memref.load %arg2[%c2_222, %c21_223] : memref<3x32xf32, #tpu.memory_space<smem>>
    %443 = vector.broadcast %442 : f32 to vector<8x256xf32>
    %444 = arith.mulf %14, %443 : vector<8x256xf32>
    %445 = arith.addf %441, %444 : vector<8x256xf32>
    %c0_224 = arith.constant 0 : index
    %c21_225 = arith.constant 21 : index
    %446 = memref.load %arg3[%c0_224, %c21_225] : memref<1x32xf32, #tpu.memory_space<smem>>
    %447 = vector.broadcast %446 : f32 to vector<8x256xf32>
    %448 = arith.addf %445, %447 : vector<8x256xf32>
    %cst_226 = arith.constant 0.000000e+00 : f32
    %449 = vector.broadcast %cst_226 : f32 to vector<8x256xf32>
    %450 = arith.maximumf %448, %449 : vector<8x256xf32>
    %cst_227 = arith.constant dense<0.000000e+00> : vector<8xf32>
    %451 = vector.multi_reduction <add>, %450, %cst_227 [1] : vector<8x256xf32> to vector<8xf32>
    %452 = vector.shape_cast %451 : vector<8xf32> to vector<8x1xf32>
    %cst_228 = arith.constant 2.560000e+02 : f32
    %453 = vector.broadcast %cst_228 : f32 to vector<8x1xf32>
    %454 = arith.divf %452, %453 : vector<8x1xf32>
    %c0_229 = arith.constant 0 : index
    %c22 = arith.constant 22 : index
    %455 = memref.load %arg2[%c0_229, %c22] : memref<3x32xf32, #tpu.memory_space<smem>>
    %456 = vector.broadcast %455 : f32 to vector<8x256xf32>
    %457 = arith.mulf %4, %456 : vector<8x256xf32>
    %c1_230 = arith.constant 1 : index
    %c22_231 = arith.constant 22 : index
    %458 = memref.load %arg2[%c1_230, %c22_231] : memref<3x32xf32, #tpu.memory_space<smem>>
    %459 = vector.broadcast %458 : f32 to vector<8x256xf32>
    %460 = arith.mulf %9, %459 : vector<8x256xf32>
    %461 = arith.addf %457, %460 : vector<8x256xf32>
    %c2_232 = arith.constant 2 : index
    %c22_233 = arith.constant 22 : index
    %462 = memref.load %arg2[%c2_232, %c22_233] : memref<3x32xf32, #tpu.memory_space<smem>>
    %463 = vector.broadcast %462 : f32 to vector<8x256xf32>
    %464 = arith.mulf %14, %463 : vector<8x256xf32>
    %465 = arith.addf %461, %464 : vector<8x256xf32>
    %c0_234 = arith.constant 0 : index
    %c22_235 = arith.constant 22 : index
    %466 = memref.load %arg3[%c0_234, %c22_235] : memref<1x32xf32, #tpu.memory_space<smem>>
    %467 = vector.broadcast %466 : f32 to vector<8x256xf32>
    %468 = arith.addf %465, %467 : vector<8x256xf32>
    %cst_236 = arith.constant 0.000000e+00 : f32
    %469 = vector.broadcast %cst_236 : f32 to vector<8x256xf32>
    %470 = arith.maximumf %468, %469 : vector<8x256xf32>
    %cst_237 = arith.constant dense<0.000000e+00> : vector<8xf32>
    %471 = vector.multi_reduction <add>, %470, %cst_237 [1] : vector<8x256xf32> to vector<8xf32>
    %472 = vector.shape_cast %471 : vector<8xf32> to vector<8x1xf32>
    %cst_238 = arith.constant 2.560000e+02 : f32
    %473 = vector.broadcast %cst_238 : f32 to vector<8x1xf32>
    %474 = arith.divf %472, %473 : vector<8x1xf32>
    %c0_239 = arith.constant 0 : index
    %c23 = arith.constant 23 : index
    %475 = memref.load %arg2[%c0_239, %c23] : memref<3x32xf32, #tpu.memory_space<smem>>
    %476 = vector.broadcast %475 : f32 to vector<8x256xf32>
    %477 = arith.mulf %4, %476 : vector<8x256xf32>
    %c1_240 = arith.constant 1 : index
    %c23_241 = arith.constant 23 : index
    %478 = memref.load %arg2[%c1_240, %c23_241] : memref<3x32xf32, #tpu.memory_space<smem>>
    %479 = vector.broadcast %478 : f32 to vector<8x256xf32>
    %480 = arith.mulf %9, %479 : vector<8x256xf32>
    %481 = arith.addf %477, %480 : vector<8x256xf32>
    %c2_242 = arith.constant 2 : index
    %c23_243 = arith.constant 23 : index
    %482 = memref.load %arg2[%c2_242, %c23_243] : memref<3x32xf32, #tpu.memory_space<smem>>
    %483 = vector.broadcast %482 : f32 to vector<8x256xf32>
    %484 = arith.mulf %14, %483 : vector<8x256xf32>
    %485 = arith.addf %481, %484 : vector<8x256xf32>
    %c0_244 = arith.constant 0 : index
    %c23_245 = arith.constant 23 : index
    %486 = memref.load %arg3[%c0_244, %c23_245] : memref<1x32xf32, #tpu.memory_space<smem>>
    %487 = vector.broadcast %486 : f32 to vector<8x256xf32>
    %488 = arith.addf %485, %487 : vector<8x256xf32>
    %cst_246 = arith.constant 0.000000e+00 : f32
    %489 = vector.broadcast %cst_246 : f32 to vector<8x256xf32>
    %490 = arith.maximumf %488, %489 : vector<8x256xf32>
    %cst_247 = arith.constant dense<0.000000e+00> : vector<8xf32>
    %491 = vector.multi_reduction <add>, %490, %cst_247 [1] : vector<8x256xf32> to vector<8xf32>
    %492 = vector.shape_cast %491 : vector<8xf32> to vector<8x1xf32>
    %cst_248 = arith.constant 2.560000e+02 : f32
    %493 = vector.broadcast %cst_248 : f32 to vector<8x1xf32>
    %494 = arith.divf %492, %493 : vector<8x1xf32>
    %c0_249 = arith.constant 0 : index
    %c24 = arith.constant 24 : index
    %495 = memref.load %arg2[%c0_249, %c24] : memref<3x32xf32, #tpu.memory_space<smem>>
    %496 = vector.broadcast %495 : f32 to vector<8x256xf32>
    %497 = arith.mulf %4, %496 : vector<8x256xf32>
    %c1_250 = arith.constant 1 : index
    %c24_251 = arith.constant 24 : index
    %498 = memref.load %arg2[%c1_250, %c24_251] : memref<3x32xf32, #tpu.memory_space<smem>>
    %499 = vector.broadcast %498 : f32 to vector<8x256xf32>
    %500 = arith.mulf %9, %499 : vector<8x256xf32>
    %501 = arith.addf %497, %500 : vector<8x256xf32>
    %c2_252 = arith.constant 2 : index
    %c24_253 = arith.constant 24 : index
    %502 = memref.load %arg2[%c2_252, %c24_253] : memref<3x32xf32, #tpu.memory_space<smem>>
    %503 = vector.broadcast %502 : f32 to vector<8x256xf32>
    %504 = arith.mulf %14, %503 : vector<8x256xf32>
    %505 = arith.addf %501, %504 : vector<8x256xf32>
    %c0_254 = arith.constant 0 : index
    %c24_255 = arith.constant 24 : index
    %506 = memref.load %arg3[%c0_254, %c24_255] : memref<1x32xf32, #tpu.memory_space<smem>>
    %507 = vector.broadcast %506 : f32 to vector<8x256xf32>
    %508 = arith.addf %505, %507 : vector<8x256xf32>
    %cst_256 = arith.constant 0.000000e+00 : f32
    %509 = vector.broadcast %cst_256 : f32 to vector<8x256xf32>
    %510 = arith.maximumf %508, %509 : vector<8x256xf32>
    %cst_257 = arith.constant dense<0.000000e+00> : vector<8xf32>
    %511 = vector.multi_reduction <add>, %510, %cst_257 [1] : vector<8x256xf32> to vector<8xf32>
    %512 = vector.shape_cast %511 : vector<8xf32> to vector<8x1xf32>
    %cst_258 = arith.constant 2.560000e+02 : f32
    %513 = vector.broadcast %cst_258 : f32 to vector<8x1xf32>
    %514 = arith.divf %512, %513 : vector<8x1xf32>
    %c0_259 = arith.constant 0 : index
    %c25 = arith.constant 25 : index
    %515 = memref.load %arg2[%c0_259, %c25] : memref<3x32xf32, #tpu.memory_space<smem>>
    %516 = vector.broadcast %515 : f32 to vector<8x256xf32>
    %517 = arith.mulf %4, %516 : vector<8x256xf32>
    %c1_260 = arith.constant 1 : index
    %c25_261 = arith.constant 25 : index
    %518 = memref.load %arg2[%c1_260, %c25_261] : memref<3x32xf32, #tpu.memory_space<smem>>
    %519 = vector.broadcast %518 : f32 to vector<8x256xf32>
    %520 = arith.mulf %9, %519 : vector<8x256xf32>
    %521 = arith.addf %517, %520 : vector<8x256xf32>
    %c2_262 = arith.constant 2 : index
    %c25_263 = arith.constant 25 : index
    %522 = memref.load %arg2[%c2_262, %c25_263] : memref<3x32xf32, #tpu.memory_space<smem>>
    %523 = vector.broadcast %522 : f32 to vector<8x256xf32>
    %524 = arith.mulf %14, %523 : vector<8x256xf32>
    %525 = arith.addf %521, %524 : vector<8x256xf32>
    %c0_264 = arith.constant 0 : index
    %c25_265 = arith.constant 25 : index
    %526 = memref.load %arg3[%c0_264, %c25_265] : memref<1x32xf32, #tpu.memory_space<smem>>
    %527 = vector.broadcast %526 : f32 to vector<8x256xf32>
    %528 = arith.addf %525, %527 : vector<8x256xf32>
    %cst_266 = arith.constant 0.000000e+00 : f32
    %529 = vector.broadcast %cst_266 : f32 to vector<8x256xf32>
    %530 = arith.maximumf %528, %529 : vector<8x256xf32>
    %cst_267 = arith.constant dense<0.000000e+00> : vector<8xf32>
    %531 = vector.multi_reduction <add>, %530, %cst_267 [1] : vector<8x256xf32> to vector<8xf32>
    %532 = vector.shape_cast %531 : vector<8xf32> to vector<8x1xf32>
    %cst_268 = arith.constant 2.560000e+02 : f32
    %533 = vector.broadcast %cst_268 : f32 to vector<8x1xf32>
    %534 = arith.divf %532, %533 : vector<8x1xf32>
    %c0_269 = arith.constant 0 : index
    %c26 = arith.constant 26 : index
    %535 = memref.load %arg2[%c0_269, %c26] : memref<3x32xf32, #tpu.memory_space<smem>>
    %536 = vector.broadcast %535 : f32 to vector<8x256xf32>
    %537 = arith.mulf %4, %536 : vector<8x256xf32>
    %c1_270 = arith.constant 1 : index
    %c26_271 = arith.constant 26 : index
    %538 = memref.load %arg2[%c1_270, %c26_271] : memref<3x32xf32, #tpu.memory_space<smem>>
    %539 = vector.broadcast %538 : f32 to vector<8x256xf32>
    %540 = arith.mulf %9, %539 : vector<8x256xf32>
    %541 = arith.addf %537, %540 : vector<8x256xf32>
    %c2_272 = arith.constant 2 : index
    %c26_273 = arith.constant 26 : index
    %542 = memref.load %arg2[%c2_272, %c26_273] : memref<3x32xf32, #tpu.memory_space<smem>>
    %543 = vector.broadcast %542 : f32 to vector<8x256xf32>
    %544 = arith.mulf %14, %543 : vector<8x256xf32>
    %545 = arith.addf %541, %544 : vector<8x256xf32>
    %c0_274 = arith.constant 0 : index
    %c26_275 = arith.constant 26 : index
    %546 = memref.load %arg3[%c0_274, %c26_275] : memref<1x32xf32, #tpu.memory_space<smem>>
    %547 = vector.broadcast %546 : f32 to vector<8x256xf32>
    %548 = arith.addf %545, %547 : vector<8x256xf32>
    %cst_276 = arith.constant 0.000000e+00 : f32
    %549 = vector.broadcast %cst_276 : f32 to vector<8x256xf32>
    %550 = arith.maximumf %548, %549 : vector<8x256xf32>
    %cst_277 = arith.constant dense<0.000000e+00> : vector<8xf32>
    %551 = vector.multi_reduction <add>, %550, %cst_277 [1] : vector<8x256xf32> to vector<8xf32>
    %552 = vector.shape_cast %551 : vector<8xf32> to vector<8x1xf32>
    %cst_278 = arith.constant 2.560000e+02 : f32
    %553 = vector.broadcast %cst_278 : f32 to vector<8x1xf32>
    %554 = arith.divf %552, %553 : vector<8x1xf32>
    %c0_279 = arith.constant 0 : index
    %c27 = arith.constant 27 : index
    %555 = memref.load %arg2[%c0_279, %c27] : memref<3x32xf32, #tpu.memory_space<smem>>
    %556 = vector.broadcast %555 : f32 to vector<8x256xf32>
    %557 = arith.mulf %4, %556 : vector<8x256xf32>
    %c1_280 = arith.constant 1 : index
    %c27_281 = arith.constant 27 : index
    %558 = memref.load %arg2[%c1_280, %c27_281] : memref<3x32xf32, #tpu.memory_space<smem>>
    %559 = vector.broadcast %558 : f32 to vector<8x256xf32>
    %560 = arith.mulf %9, %559 : vector<8x256xf32>
    %561 = arith.addf %557, %560 : vector<8x256xf32>
    %c2_282 = arith.constant 2 : index
    %c27_283 = arith.constant 27 : index
    %562 = memref.load %arg2[%c2_282, %c27_283] : memref<3x32xf32, #tpu.memory_space<smem>>
    %563 = vector.broadcast %562 : f32 to vector<8x256xf32>
    %564 = arith.mulf %14, %563 : vector<8x256xf32>
    %565 = arith.addf %561, %564 : vector<8x256xf32>
    %c0_284 = arith.constant 0 : index
    %c27_285 = arith.constant 27 : index
    %566 = memref.load %arg3[%c0_284, %c27_285] : memref<1x32xf32, #tpu.memory_space<smem>>
    %567 = vector.broadcast %566 : f32 to vector<8x256xf32>
    %568 = arith.addf %565, %567 : vector<8x256xf32>
    %cst_286 = arith.constant 0.000000e+00 : f32
    %569 = vector.broadcast %cst_286 : f32 to vector<8x256xf32>
    %570 = arith.maximumf %568, %569 : vector<8x256xf32>
    %cst_287 = arith.constant dense<0.000000e+00> : vector<8xf32>
    %571 = vector.multi_reduction <add>, %570, %cst_287 [1] : vector<8x256xf32> to vector<8xf32>
    %572 = vector.shape_cast %571 : vector<8xf32> to vector<8x1xf32>
    %cst_288 = arith.constant 2.560000e+02 : f32
    %573 = vector.broadcast %cst_288 : f32 to vector<8x1xf32>
    %574 = arith.divf %572, %573 : vector<8x1xf32>
    %c0_289 = arith.constant 0 : index
    %c28 = arith.constant 28 : index
    %575 = memref.load %arg2[%c0_289, %c28] : memref<3x32xf32, #tpu.memory_space<smem>>
    %576 = vector.broadcast %575 : f32 to vector<8x256xf32>
    %577 = arith.mulf %4, %576 : vector<8x256xf32>
    %c1_290 = arith.constant 1 : index
    %c28_291 = arith.constant 28 : index
    %578 = memref.load %arg2[%c1_290, %c28_291] : memref<3x32xf32, #tpu.memory_space<smem>>
    %579 = vector.broadcast %578 : f32 to vector<8x256xf32>
    %580 = arith.mulf %9, %579 : vector<8x256xf32>
    %581 = arith.addf %577, %580 : vector<8x256xf32>
    %c2_292 = arith.constant 2 : index
    %c28_293 = arith.constant 28 : index
    %582 = memref.load %arg2[%c2_292, %c28_293] : memref<3x32xf32, #tpu.memory_space<smem>>
    %583 = vector.broadcast %582 : f32 to vector<8x256xf32>
    %584 = arith.mulf %14, %583 : vector<8x256xf32>
    %585 = arith.addf %581, %584 : vector<8x256xf32>
    %c0_294 = arith.constant 0 : index
    %c28_295 = arith.constant 28 : index
    %586 = memref.load %arg3[%c0_294, %c28_295] : memref<1x32xf32, #tpu.memory_space<smem>>
    %587 = vector.broadcast %586 : f32 to vector<8x256xf32>
    %588 = arith.addf %585, %587 : vector<8x256xf32>
    %cst_296 = arith.constant 0.000000e+00 : f32
    %589 = vector.broadcast %cst_296 : f32 to vector<8x256xf32>
    %590 = arith.maximumf %588, %589 : vector<8x256xf32>
    %cst_297 = arith.constant dense<0.000000e+00> : vector<8xf32>
    %591 = vector.multi_reduction <add>, %590, %cst_297 [1] : vector<8x256xf32> to vector<8xf32>
    %592 = vector.shape_cast %591 : vector<8xf32> to vector<8x1xf32>
    %cst_298 = arith.constant 2.560000e+02 : f32
    %593 = vector.broadcast %cst_298 : f32 to vector<8x1xf32>
    %594 = arith.divf %592, %593 : vector<8x1xf32>
    %c0_299 = arith.constant 0 : index
    %c29 = arith.constant 29 : index
    %595 = memref.load %arg2[%c0_299, %c29] : memref<3x32xf32, #tpu.memory_space<smem>>
    %596 = vector.broadcast %595 : f32 to vector<8x256xf32>
    %597 = arith.mulf %4, %596 : vector<8x256xf32>
    %c1_300 = arith.constant 1 : index
    %c29_301 = arith.constant 29 : index
    %598 = memref.load %arg2[%c1_300, %c29_301] : memref<3x32xf32, #tpu.memory_space<smem>>
    %599 = vector.broadcast %598 : f32 to vector<8x256xf32>
    %600 = arith.mulf %9, %599 : vector<8x256xf32>
    %601 = arith.addf %597, %600 : vector<8x256xf32>
    %c2_302 = arith.constant 2 : index
    %c29_303 = arith.constant 29 : index
    %602 = memref.load %arg2[%c2_302, %c29_303] : memref<3x32xf32, #tpu.memory_space<smem>>
    %603 = vector.broadcast %602 : f32 to vector<8x256xf32>
    %604 = arith.mulf %14, %603 : vector<8x256xf32>
    %605 = arith.addf %601, %604 : vector<8x256xf32>
    %c0_304 = arith.constant 0 : index
    %c29_305 = arith.constant 29 : index
    %606 = memref.load %arg3[%c0_304, %c29_305] : memref<1x32xf32, #tpu.memory_space<smem>>
    %607 = vector.broadcast %606 : f32 to vector<8x256xf32>
    %608 = arith.addf %605, %607 : vector<8x256xf32>
    %cst_306 = arith.constant 0.000000e+00 : f32
    %609 = vector.broadcast %cst_306 : f32 to vector<8x256xf32>
    %610 = arith.maximumf %608, %609 : vector<8x256xf32>
    %cst_307 = arith.constant dense<0.000000e+00> : vector<8xf32>
    %611 = vector.multi_reduction <add>, %610, %cst_307 [1] : vector<8x256xf32> to vector<8xf32>
    %612 = vector.shape_cast %611 : vector<8xf32> to vector<8x1xf32>
    %cst_308 = arith.constant 2.560000e+02 : f32
    %613 = vector.broadcast %cst_308 : f32 to vector<8x1xf32>
    %614 = arith.divf %612, %613 : vector<8x1xf32>
    %c0_309 = arith.constant 0 : index
    %c30 = arith.constant 30 : index
    %615 = memref.load %arg2[%c0_309, %c30] : memref<3x32xf32, #tpu.memory_space<smem>>
    %616 = vector.broadcast %615 : f32 to vector<8x256xf32>
    %617 = arith.mulf %4, %616 : vector<8x256xf32>
    %c1_310 = arith.constant 1 : index
    %c30_311 = arith.constant 30 : index
    %618 = memref.load %arg2[%c1_310, %c30_311] : memref<3x32xf32, #tpu.memory_space<smem>>
    %619 = vector.broadcast %618 : f32 to vector<8x256xf32>
    %620 = arith.mulf %9, %619 : vector<8x256xf32>
    %621 = arith.addf %617, %620 : vector<8x256xf32>
    %c2_312 = arith.constant 2 : index
    %c30_313 = arith.constant 30 : index
    %622 = memref.load %arg2[%c2_312, %c30_313] : memref<3x32xf32, #tpu.memory_space<smem>>
    %623 = vector.broadcast %622 : f32 to vector<8x256xf32>
    %624 = arith.mulf %14, %623 : vector<8x256xf32>
    %625 = arith.addf %621, %624 : vector<8x256xf32>
    %c0_314 = arith.constant 0 : index
    %c30_315 = arith.constant 30 : index
    %626 = memref.load %arg3[%c0_314, %c30_315] : memref<1x32xf32, #tpu.memory_space<smem>>
    %627 = vector.broadcast %626 : f32 to vector<8x256xf32>
    %628 = arith.addf %625, %627 : vector<8x256xf32>
    %cst_316 = arith.constant 0.000000e+00 : f32
    %629 = vector.broadcast %cst_316 : f32 to vector<8x256xf32>
    %630 = arith.maximumf %628, %629 : vector<8x256xf32>
    %cst_317 = arith.constant dense<0.000000e+00> : vector<8xf32>
    %631 = vector.multi_reduction <add>, %630, %cst_317 [1] : vector<8x256xf32> to vector<8xf32>
    %632 = vector.shape_cast %631 : vector<8xf32> to vector<8x1xf32>
    %cst_318 = arith.constant 2.560000e+02 : f32
    %633 = vector.broadcast %cst_318 : f32 to vector<8x1xf32>
    %634 = arith.divf %632, %633 : vector<8x1xf32>
    %c0_319 = arith.constant 0 : index
    %c31 = arith.constant 31 : index
    %635 = memref.load %arg2[%c0_319, %c31] : memref<3x32xf32, #tpu.memory_space<smem>>
    %636 = vector.broadcast %635 : f32 to vector<8x256xf32>
    %637 = arith.mulf %4, %636 : vector<8x256xf32>
    %c1_320 = arith.constant 1 : index
    %c31_321 = arith.constant 31 : index
    %638 = memref.load %arg2[%c1_320, %c31_321] : memref<3x32xf32, #tpu.memory_space<smem>>
    %639 = vector.broadcast %638 : f32 to vector<8x256xf32>
    %640 = arith.mulf %9, %639 : vector<8x256xf32>
    %641 = arith.addf %637, %640 : vector<8x256xf32>
    %c2_322 = arith.constant 2 : index
    %c31_323 = arith.constant 31 : index
    %642 = memref.load %arg2[%c2_322, %c31_323] : memref<3x32xf32, #tpu.memory_space<smem>>
    %643 = vector.broadcast %642 : f32 to vector<8x256xf32>
    %644 = arith.mulf %14, %643 : vector<8x256xf32>
    %645 = arith.addf %641, %644 : vector<8x256xf32>
    %c0_324 = arith.constant 0 : index
    %c31_325 = arith.constant 31 : index
    %646 = memref.load %arg3[%c0_324, %c31_325] : memref<1x32xf32, #tpu.memory_space<smem>>
    %647 = vector.broadcast %646 : f32 to vector<8x256xf32>
    %648 = arith.addf %645, %647 : vector<8x256xf32>
    %cst_326 = arith.constant 0.000000e+00 : f32
    %649 = vector.broadcast %cst_326 : f32 to vector<8x256xf32>
    %650 = arith.maximumf %648, %649 : vector<8x256xf32>
    %cst_327 = arith.constant dense<0.000000e+00> : vector<8xf32>
    %651 = vector.multi_reduction <add>, %650, %cst_327 [1] : vector<8x256xf32> to vector<8xf32>
    %652 = vector.shape_cast %651 : vector<8xf32> to vector<8x1xf32>
    %cst_328 = arith.constant 2.560000e+02 : f32
    %653 = vector.broadcast %cst_328 : f32 to vector<8x1xf32>
    %654 = arith.divf %652, %653 : vector<8x1xf32>
    %655 = tpu.concatenate %34, %54, %74, %94, %114, %134, %154, %174, %194, %214, %234, %254, %274, %294, %314, %334 in 1 : vector<8x1xf32>, vector<8x1xf32>, vector<8x1xf32>, vector<8x1xf32>, vector<8x1xf32>, vector<8x1xf32>, vector<8x1xf32>, vector<8x1xf32>, vector<8x1xf32>, vector<8x1xf32>, vector<8x1xf32>, vector<8x1xf32>, vector<8x1xf32>, vector<8x1xf32>, vector<8x1xf32>, vector<8x1xf32> -> vector<8x16xf32>
    %656 = tpu.concatenate %354, %374, %394, %414, %434, %454, %474, %494, %514, %534, %554, %574, %594, %614, %634, %654 in 1 : vector<8x1xf32>, vector<8x1xf32>, vector<8x1xf32>, vector<8x1xf32>, vector<8x1xf32>, vector<8x1xf32>, vector<8x1xf32>, vector<8x1xf32>, vector<8x1xf32>, vector<8x1xf32>, vector<8x1xf32>, vector<8x1xf32>, vector<8x1xf32>, vector<8x1xf32>, vector<8x1xf32>, vector<8x1xf32> -> vector<8x16xf32>
    %657 = tpu.concatenate %655, %656 in 1 : vector<8x16xf32>, vector<8x16xf32> -> vector<8x32xf32>
    %c0_329 = arith.constant 0 : index
    %c0_330 = arith.constant 0 : index
    %658 = vector.load %arg4[%c0_329, %c0_330] : memref<32x24xf32, #tpu.memory_space<vmem>>, vector<32x24xf32>
    %cst_331 = arith.constant dense<0.000000e+00> : vector<8x24xf32>
    %659 = tpu.matmul %657, %658, %cst_331 {dimension_numbers = #tpu.dot_dimension_numbers<[1], [0], [0], [1], [0, 0, 1, 1], [], []>} : vector<8x32xf32>, vector<32x24xf32>, vector<8x24xf32> -> vector<8x24xf32>
    %c0_332 = arith.constant 0 : index
    %c0_333 = arith.constant 0 : index
    %660 = vector.load %arg5[%c0_332, %c0_333] : memref<1x24xf32, #tpu.memory_space<vmem>>, vector<1x24xf32>
    %661 = vector.broadcast %660 : vector<1x24xf32> to vector<8x24xf32>
    %662 = arith.addf %659, %661 : vector<8x24xf32>
    %663 = vector.extract_strided_slice %662 {offsets = [0, 16], sizes = [8, 8], strides = [1, 1]} : vector<8x24xf32> to vector<8x8xf32>
    %cst_334 = arith.constant dense<0xFF800000> : vector<8xf32>
    %664 = vector.multi_reduction <maximumf>, %663, %cst_334 [1] : vector<8x8xf32> to vector<8xf32>
    %665 = vector.shape_cast %664 : vector<8xf32> to vector<8x1xf32>
    %666 = vector.broadcast %665 : vector<8x1xf32> to vector<8x8xf32>
    %667 = arith.subf %663, %666 : vector<8x8xf32>
    %668 = math.exp %667 : vector<8x8xf32>
    %cst_335 = arith.constant dense<0.000000e+00> : vector<8xf32>
    %669 = vector.multi_reduction <add>, %668, %cst_335 [1] : vector<8x8xf32> to vector<8xf32>
    %670 = vector.shape_cast %669 : vector<8xf32> to vector<8x1xf32>
    %671 = tpu.reciprocal %670 {approx = true} : vector<8x1xf32> -> vector<8x1xf32>
    %672 = vector.broadcast %671 : vector<8x1xf32> to vector<8x8xf32>
    %673 = arith.mulf %668, %672 : vector<8x8xf32>
    %cst_336 = arith.constant 0.000000e+00 : f32
    %674 = vector.broadcast %cst_336 : f32 to vector<8x96xf32>
    %675 = tpu.concatenate %662, %673, %674 in 1 : vector<8x24xf32>, vector<8x8xf32>, vector<8x96xf32> -> vector<8x128xf32>
    %c0_337 = arith.constant 0 : index
    %c0_338 = arith.constant 0 : index
    %676 = vector.load %arg6[%c0_337, %c0_338] : memref<8x128xf32, #tpu.memory_space<vmem>>, vector<8x128xf32>
    tpu.vector_store %arg6[%c0_337, %c0_338], %675 {strides = array<i32>} : memref<8x128xf32, #tpu.memory_space<vmem>>, vector<8x128xf32>,
    return
  }
  func.func @transform_0(%arg0: i32) -> (i32, i32) {
    %c0_i32 = arith.constant 0 : i32
    %c0_i32_0 = arith.constant 0 : i32
    return %arg0, %c0_i32 : i32, i32
  }
  func.func @transform_1(%arg0: i32) -> (i32, i32) {
    %c0_i32 = arith.constant 0 : i32
    %c0_i32_0 = arith.constant 0 : i32
    %c0_i32_1 = arith.constant 0 : i32
    return %c0_i32, %c0_i32_0 : i32, i32
  }
  func.func @transform_2(%arg0: i32) -> (i32, i32) {
    %c0_i32 = arith.constant 0 : i32
    %c0_i32_0 = arith.constant 0 : i32
    %c0_i32_1 = arith.constant 0 : i32
    return %c0_i32, %c0_i32_0 : i32, i32
  }
  func.func @transform_3(%arg0: i32) -> (i32, i32) {
    %c0_i32 = arith.constant 0 : i32
    %c0_i32_0 = arith.constant 0 : i32
    %c0_i32_1 = arith.constant 0 : i32
    return %c0_i32, %c0_i32_0 : i32, i32
  }
  func.func @transform_4(%arg0: i32) -> (i32, i32) {
    %c0_i32 = arith.constant 0 : i32
    %c0_i32_0 = arith.constant 0 : i32
    %c0_i32_1 = arith.constant 0 : i32
    return %c0_i32, %c0_i32_0 : i32, i32
  }
  func.func @transform_5(%arg0: i32) -> (i32, i32) {
    %c0_i32 = arith.constant 0 : i32
    %c0_i32_0 = arith.constant 0 : i32
    return %arg0, %c0_i32 : i32, i32
  }
}

</mosaic_0001>

<bundles_post_ra>
// kernel: tpu_custom_call.1
= control target key start
LH: loop header
LB: loop body
LE: loop exit
PB: predicated region body
PF: predicated region fallthrough
CT: control target
= control target key end

     0   :  { %10 = vsyncpa [#allocation4], 0  ;;  %s1984_s0 = inlined_call_operand.vmem [shape: f32[8,768], index: 0, kind: input, shape index: {}]   ;;  %s1985_s1 = inlined_call_operand.vmem [shape: f32[3,32], index: 1, kind: input, shape index: {}]   ;;  %s1986_s2 = inlined_call_operand.vmem [shape: f32[1,32], index: 2, kind: input, shape index: {}]   ;;  %s1987_s3 = inlined_call_operand.vmem [shape: f32[32,24], index: 3, kind: input, shape index: {}]   ;;  %s1988_s4 = inlined_call_operand.vmem [shape: f32[1,24], index: 4, kind: input, shape index: {}]   ;;  %s1989_s5 = inlined_call_operand.hbm [shape: f32[8,128], index: 5, kind: output, shape index: {}]  }
   0x1   :  { %11 = vsyncpa [#allocation6], 0 }
   0x2   :  { %12 = vsyncpa [#allocation3], 0  ;;  %s21_s20 = sshll.u32 %s1985_s1, 4  ;;  %s31_s23 = sshll.u32 %s1986_s2, 4  ;;  %s22_s20 = int_to_ptr.vmem [resolvable:$true] %s21_s20  ;;  %s32_s23 = int_to_ptr.vmem [resolvable:$true] %s31_s23 }
   0x3   :  { %s1236_s24 = scalar_lea.vmem %s22_s20, 64  ;;  %p1241_p1 = scmp.lt.s32.totalorder %s22_s20, %s22_s20 }
   0x4   :  { %p1237_p0 = scmp.ne.s32.totalorder %s22_s20, %s1236_s24  ;;  %p1242_p2 = scmp.lt.s32.totalorder %s1236_s24, %s1236_s24 }
   0x6   :  { %p1243_p3 = por %p1242_p2, %p1241_p1 }
   0x8   :  { %p1244_p4 = pnand %p1243_p3, %p1237_p0 }
   0xa   :  { %1247 = shalt.err (!%p1244_p4)
}
   0xb   :  { %s1288_s25 = smov [#allocation2]   ;;  %s1248_s26 = scalar_lea.vmem %s32_s23, 16 }
   0xc   :  { %24 = dma.vmem_to_smem %s22_s20, 64, %s1288_s25, [#allocation4]  }
   0xd   :  { %p1249_p5 = scmp.ne.s32.totalorder %s32_s23, %s1248_s26  ;;  %p1253_p6 = scmp.lt.s32.totalorder %s32_s23, %s32_s23 }
   0xe   :  { %p1254_p7 = scmp.lt.s32.totalorder %s1248_s26, %s1248_s26 }
  0x10   :  { %p1255_p8 = por %p1254_p7, %p1253_p6 }
  0x12   :  { %p1256_p9 = pnand %p1255_p8, %p1249_p5 }
  0x14   :  { %1259 = shalt.err (!%p1256_p9)
}
  0x15   :  { %s1289_s1 = smov [#allocation5]  }
  0x16   :  { %34 = dma.vmem_to_smem %s32_s23, 16, %s1289_s1, [#allocation6]  }
  0x17   :  { %1282 = dma.done.wait [#allocation4], 64  }
  0x18   :  { %1283 = vsyncadd [#allocation4], 4294967232 }
  0x19   :  { %1284 = dma.done.wait [#allocation6], 16  }
  0x1a   :  { %1285 = vsyncadd [#allocation6], 4294967280 }
  0x1b   :  { %45 = sfence }
  0x1c   :  { %v46_v0 = vld [vmem:[%s1984_s0] sm:$0xff]  ;;  %v47_v1 = vld [vmem:[%s1984_s0 + $0x8] sm:$0xff]  ;;  %v52_v2 = vld [vmem:[%s1984_s0 + $0x10] sm:$0xff]  ;;  %s1135_s7 = sld [smem:[#allocation2 + $0x10]]  ;;  %s1143_s17 = sld [smem:[#allocation2 + $0x12]]  ;;  %vm897_vm0 = vcmask 7168  }
  0x1d   :  { %v48_v3 = vmax.f32 %v46_v0, 0.0  ;;  %v49_v4 = vmax.f32 %v47_v1, 0.0  ;;  %v53_v5 = vld [vmem:[%s1984_s0 + $0x18] sm:$0xff]  ;;  %v54_v6 = vmax.f32 %v52_v2, 0.0  ;;  %v58_v7 = vld [vmem:[%s1984_s0 + $0x20] sm:$0xff]  ;;  %v59_v8 = vld [vmem:[%s1984_s0 + $0x28] sm:$0xff] }
  0x1e   :  { %v55_v9 = vmax.f32 %v53_v5, 0.0  ;;  %v60_v10 = vmax.f32 %v58_v7, 0.0  ;;  %v61_v11 = vmax.f32 %v59_v8, 0.0  ;;  %s1136_s14 = sld [smem:[#allocation2 + $0x90]]  ;;  %s1144_s18 = sld [smem:[#allocation2 + $0x92]]  ;;  %vm899_vm1 = vcmask 15360  }
  0x1f   :  { %v1351_v12 = vmin.f32 %v48_v3, 1.0  ;;  %v1353_v13 = vmin.f32 %v49_v4, 1.0  ;;  %s1137_s15 = sld [smem:[#allocation2 + $0x110]]  ;;  %v1357_v14 = vmin.f32 %v54_v6, 1.0  ;;  %s1365_s0 = sld [smem:[#allocation2 + $0x112]]  ;;  %vm901_vm2 = vcmask 23552  }
  0x20   :  { %s1355_s16 = sld [smem:[#allocation5 + $0x10]]  ;;  %v1359_v15 = vmin.f32 %v55_v9, 1.0  ;;  %v1361_v16 = vmin.f32 %v60_v10, 1.0  ;;  %v1363_v17 = vmin.f32 %v61_v11, 1.0  ;;  %s1367_s19 = sld [smem:[#allocation5 + $0x12]]  ;;  %vm903_vm3 = vcmask 31744  }
  0x21   :  { %s1371_s20 = sld [smem:[#allocation2 + $0x11]]  ;;  %s1388_s24 = sld [smem:[#allocation2 + $0x13]]  ;;  %vm905_vm4 = vcmask 39936   ;;  %vm907_vm5 = vcmask 48128   ;;  %vm909_vm6 = vcmask 56320   ;;  %vm911_vm7 = vcmask 64512  }
  0x22   :  { %v482_v18 = vstv %s1135_s7  ;;  %s1373_s21 = sld [smem:[#allocation2 + $0x91]]  ;;  %v534_v30 = vstv %s1143_s17  ;;  %s1392_s25 = sld [smem:[#allocation2 + $0x93]]  ;;  %vm913_vm8 = vcmask 72704   ;;  %vm915_vm9 = vcmask 80896  }
  0x23   :  { %v483_v19 = vmul.f32 %v482_v18, %v1351_v12  ;;  %v484_v20 = vmul.f32 %v482_v18, %v1353_v13  ;;  %s1380_s22 = sld [smem:[#allocation2 + $0x111]]  ;;  %v535_v32 = vmul.f32 %v534_v30, %v1351_v12  ;;  %v536_v33 = vmul.f32 %v534_v30, %v1353_v13  ;;  %s1396_s26 = sld [smem:[#allocation2 + $0x113]] }
  0x24   :  { %v486_v21 = vstv %s1136_s14  ;;  %s1382_s23 = sld [smem:[#allocation5 + $0x11]]  ;;  %v538_v31 = vstv %s1144_s18  ;;  %s1400_s1 = sld [smem:[#allocation5 + $0x13]]  ;;  %vm1291_vm10 = vmmov 0   ;;  %vm917_vm11 = vcmask 89088  }
  0x25   :  { %v487_v22 = vmul.f32 %v486_v21, %v1357_v14  ;;  %v488_v23 = vmul.f32 %v486_v21, %v1359_v15  ;;  %v492_v24 = vstv %s1137_s15  ;;  %v539_v34 = vmul.f32 %v538_v31, %v1357_v14  ;;  %s1402_s2 = sld [smem:[#allocation2 + $0x14]]  ;;  %s1422_s30 = sld [smem:[#allocation2 + $0x15]] }
  0x26   :  { %v493_v25 = vmul.f32 %v492_v24, %v1361_v16  ;;  %v494_v26 = vmul.f32 %v492_v24, %v1363_v17  ;;  %v498_v27 = vstv %s1355_s16  ;;  %v540_v35 = vmul.f32 %v538_v31, %v1359_v15  ;;  %s1410_s27 = sld [smem:[#allocation2 + $0x94]]  ;;  %s1426_s6 = sld [smem:[#allocation2 + $0x95]] }
  0x27   :  { %v489_v28 = vadd.f32 %v487_v22, %v483_v19  ;;  %v490_v29 = vadd.f32 %v488_v23, %v484_v20  ;;  %v544_v38 = vstv %s1365_s0  ;;  %v550_v39 = vstv %s1367_s19  ;;  %s1412_s28 = sld [smem:[#allocation2 + $0x114]]  ;;  %s1431_s7 = sld [smem:[#allocation2 + $0x115]] }
  0x28   :  { %v541_v40 = vadd.f32 %v539_v34, %v535_v32  ;;  %v542_v41 = vadd.f32 %v540_v35, %v536_v33  ;;  %v545_v42 = vmul.f32 %v544_v38, %v1361_v16  ;;  %v546_v43 = vmul.f32 %v544_v38, %v1363_v17  ;;  %s1417_s29 = sld [smem:[#allocation5 + $0x14]]  ;;  %s1434_s8 = sld [smem:[#allocation5 + $0x15]] }
  0x29   :  { %v495_v36 = vadd.f32 %v493_v25, %v489_v28  ;;  %v496_v37 = vadd.f32 %v494_v26, %v490_v29  ;;  %v508_v46 = vstv %s1371_s20  ;;  %v512_v47 = vstv %s1373_s21  ;;  %s1436_s9 = sld [smem:[#allocation2 + $0x16]]  ;;  %s1455_s13 = sld [smem:[#allocation2 + $0x17]] }
  0x2a   :  { %v547_v48 = vadd.f32 %v545_v42, %v541_v40  ;;  %v548_v49 = vadd.f32 %v546_v43, %v542_v41  ;;  %v509_v50 = vmul.f32 %v508_v46, %v1351_v12  ;;  %v510_v51 = vmul.f32 %v508_v46, %v1353_v13  ;;  %s1446_s10 = sld [smem:[#allocation2 + $0x96]]  ;;  %s1465_s14 = sld [smem:[#allocation2 + $0x97]] }
  0x2b   :  { %v499_v44 = vadd.f32 %v498_v27, %v495_v36  ;;  %v500_v45 = vadd.f32 %v498_v27, %v496_v37  ;;  %v513_v54 = vmul.f32 %v512_v47, %v1357_v14  ;;  %v514_v55 = vmul.f32 %v512_v47, %v1359_v15  ;;  %s1450_s11 = sld [smem:[#allocation2 + $0x116]]  ;;  %s1467_s15 = sld [smem:[#allocation2 + $0x117]] }
  0x2c   :  { %v551_v56 = vadd.f32 %v550_v39, %v547_v48  ;;  %v552_v57 = vadd.f32 %v550_v39, %v548_v49  ;;  %v518_v58 = vstv %s1380_s22  ;;  %v524_v59 = vstv %s1382_s23  ;;  %s1453_s12 = sld [smem:[#allocation5 + $0x16]]  ;;  %s1472_s16 = sld [smem:[#allocation5 + $0x17]] }
  0x2d   :  { %v501_v52 = vmax.f32 %v499_v44, 0.0  ;;  %v502_v53 = vmax.f32 %v500_v45, 0.0  ;;  %v515_v61 = vadd.f32 %v513_v54, %v509_v50  ;;  %v516_v62 = vadd.f32 %v514_v55, %v510_v51  ;;  %s1476_s17 = sld [smem:[#allocation2 + $0x18]]  ;;  %s1495_s20 = sld [smem:[#allocation2 + $0x19]] }
  0x2e   :  { %v519_v63 = vmul.f32 %v518_v58, %v1361_v16  ;;  %v553_v0 = vmax.f32 %v551_v56, 0.0  ;;  %v554_v1 = vmax.f32 %v552_v57, 0.0  ;;  %v520_v2 = vmul.f32 %v518_v58, %v1363_v17  ;;  %s1478_s18 = sld [smem:[#allocation2 + $0x98]]  ;;  %s1502_s21 = sld [smem:[#allocation2 + $0x99]] }
  0x2f   :  { %v503_v60 = vadd.f32 %v502_v53, %v501_v52  ;;  %v560_v3 = vstv %s1388_s24  ;;  %v564_v7 = vstv %s1392_s25  ;;  %v570_v19 = vstv %s1396_s26  ;;  %s1482_s0 = sld [smem:[#allocation2 + $0x118]]  ;;  %s1504_s22 = sld [smem:[#allocation2 + $0x119]] }
  0x30   :  { %v521_v4 = vadd.f32 %v519_v63, %v515_v61  ;;  %v561_v5 = vmul.f32 %v560_v3, %v1351_v12  ;;  %v562_v6 = vmul.f32 %v560_v3, %v1353_v13  ;;  %v555_v8 = vadd.f32 %v554_v1, %v553_v0  ;;  %s1484_s19 = sld [smem:[#allocation5 + $0x18]]  ;;  %s1510_s23 = sld [smem:[#allocation5 + $0x19]] }
  0x31   :  { %504 = vadd.xlane.f32.xlu0 %v503_v60  ;;  %v522_v9 = vadd.f32 %v520_v2, %v516_v62  ;;  %v565_v10 = vmul.f32 %v564_v7, %v1357_v14  ;;  %v566_v11 = vmul.f32 %v564_v7, %v1359_v15  ;;  %v576_v20 = vstv %s1400_s1  ;;  %s1512_s24 = sld [smem:[#allocation2 + $0x1a]] }
  0x32   :  { %v525_v18 = vadd.f32 %v524_v59, %v521_v4  ;;  %v586_v21 = vstv %s1402_s2  ;;  %556 = vadd.xlane.f32.xlu1 %v555_v8  ;;  %v571_v25 = vmul.f32 %v570_v19, %v1361_v16  ;;  %v572_v27 = vmul.f32 %v570_v19, %v1363_v17  ;;  %s1514_s25 = sld [smem:[#allocation2 + $0x9a]]  ;;  %s1527_s2 = sld [smem:[#allocation2 + $0x1b]] }
  0x33   :  { %v526_v22 = vadd.f32 %v524_v59, %v522_v9  ;;  %v567_v23 = vadd.f32 %v565_v10, %v561_v5  ;;  %v568_v24 = vadd.f32 %v566_v11, %v562_v6  ;;  %v587_v28 = vmul.f32 %v586_v21, %v1351_v12  ;;  %s1521_s26 = sld [smem:[#allocation2 + $0x11a]] }
  0x34   :  { %v527_v26 = vmax.f32 %v525_v18, 0.0  ;;  %v588_v29 = vmul.f32 %v586_v21, %v1353_v13  ;;  %v590_v32 = vstv %s1410_s27  ;;  %v596_v33 = vstv %s1412_s28  ;;  %s1525_s1 = sld [smem:[#allocation5 + $0x1a]]  ;;  %s1536_s27 = sld [smem:[#allocation2 + $0x9b]] }
  0x35   :  { %v528_v30 = vmax.f32 %v526_v22, 0.0  ;;  %v573_v31 = vadd.f32 %v571_v25, %v567_v23  ;;  %v574_v34 = vadd.f32 %v572_v27, %v568_v24  ;;  %v591_v35 = vmul.f32 %v590_v32, %v1357_v14  ;;  %s1538_s28 = sld [smem:[#allocation2 + $0x11b]] }
  0x36   :  { %v592_v36 = vmul.f32 %v590_v32, %v1359_v15  ;;  %v597_v37 = vmul.f32 %v596_v33, %v1361_v16  ;;  %v598_v40 = vmul.f32 %v596_v33, %v1363_v17  ;;  %v602_v41 = vstv %s1417_s29  ;;  %s1544_s29 = sld [smem:[#allocation5 + $0x1b]] }
  0x37   :  { %v529_v38 = vadd.f32 %v528_v30, %v527_v26  ;;  %v577_v39 = vadd.f32 %v576_v20, %v573_v31  ;;  %v578_v42 = vadd.f32 %v576_v20, %v574_v34  ;;  %v593_v43 = vadd.f32 %v591_v35, %v587_v28 }
  0x38   :  { %v594_v44 = vadd.f32 %v592_v36, %v588_v29  ;;  %v612_v45 = vstv %s1422_s30  ;;  %v616_v49 = vstv %s1426_s6  ;;  %v622_v55 = vstv %s1431_s7  ;;  %s1548_s30 = sld [smem:[#allocation2 + $0x1c]] }
  0x39   :  { %530 = vadd.xlane.f32.xlu0 %v529_v38  ;;  %v579_v46 = vmax.f32 %v577_v39, 0.0  ;;  %v613_v47 = vmul.f32 %v612_v45, %v1351_v12  ;;  %v614_v48 = vmul.f32 %v612_v45, %v1353_v13  ;;  %v580_v50 = vmax.f32 %v578_v42, 0.0  ;;  %s1550_s6 = sld [smem:[#allocation2 + $0x9c]] }
  0x3a   :  { %v599_v51 = vadd.f32 %v597_v37, %v593_v43  ;;  %v600_v52 = vadd.f32 %v598_v40, %v594_v44  ;;  %v617_v53 = vmul.f32 %v616_v49, %v1357_v14  ;;  %v618_v54 = vmul.f32 %v616_v49, %v1359_v15  ;;  %s1554_s7 = sld [smem:[#allocation2 + $0x11c]] }
  0x3b   :  { %v628_v56 = vstv %s1434_s8  ;;  %v638_v57 = vstv %s1436_s9  ;;  %v581_v58 = vadd.f32 %v580_v50, %v579_v46  ;;  %v623_v63 = vmul.f32 %v622_v55, %v1361_v16  ;;  %s1556_s8 = sld [smem:[#allocation5 + $0x1c]]  ;;  %s1567_s9 = sld [smem:[#allocation2 + $0x1d]] }
  0x3c   :  { %v603_v59 = vadd.f32 %v602_v41, %v599_v51  ;;  %v604_v60 = vadd.f32 %v602_v41, %v600_v52  ;;  %v619_v61 = vadd.f32 %v617_v53, %v613_v47  ;;  %v620_v62 = vadd.f32 %v618_v54, %v614_v48 }
  0x3d   :  { %v624_v0 = vmul.f32 %v622_v55, %v1363_v17  ;;  %v639_v1 = vmul.f32 %v638_v57, %v1351_v12  ;;  %582 = vadd.xlane.f32.xlu1 %v581_v58  ;;  %v640_v4 = vmul.f32 %v638_v57, %v1353_v13  ;;  %v642_v5 = vstv %s1446_s10  ;;  %s1574_s10 = sld [smem:[#allocation2 + $0x9d]] }
  0x3e   :  { %v605_v2 = vmax.f32 %v603_v59, 0.0  ;;  %v606_v3 = vmax.f32 %v604_v60, 0.0  ;;  %v625_v6 = vadd.f32 %v623_v63, %v619_v61  ;;  %v643_v8 = vmul.f32 %v642_v5, %v1357_v14 }
  0x3f   :  { %v626_v7 = vadd.f32 %v624_v0, %v620_v62  ;;  %v644_v9 = vmul.f32 %v642_v5, %v1359_v15  ;;  %v648_v11 = vstv %s1450_s11  ;;  %v654_v18 = vstv %s1453_s12  ;;  %s1576_s11 = sld [smem:[#allocation2 + $0x11d]] }
  0x40   :  { %v607_v10 = vadd.f32 %v606_v3, %v605_v2  ;;  %v664_v19 = vstv %s1455_s13  ;;  %v629_v20 = vadd.f32 %v628_v56, %v625_v6  ;;  %v645_v22 = vadd.f32 %v643_v8, %v639_v1  ;;  %s1582_s12 = sld [smem:[#allocation5 + $0x1d]]  ;;  %s1584_s13 = sld [smem:[#allocation2 + $0x1e]] }
  0x41   :  { %v630_v21 = vadd.f32 %v628_v56, %v626_v7  ;;  %v646_v23 = vadd.f32 %v644_v9, %v640_v4  ;;  %v649_v24 = vmul.f32 %v648_v11, %v1361_v16  ;;  %v650_v25 = vmul.f32 %v648_v11, %v1363_v17 }
  0x42   :  { %608 = vadd.xlane.f32.xlu0 %v607_v10  ;;  %v665_v26 = vmul.f32 %v664_v19, %v1351_v12  ;;  %v666_v27 = vmul.f32 %v664_v19, %v1353_v13  ;;  %v631_v28 = vmax.f32 %v629_v20, 0.0  ;;  %v668_v30 = vstv %s1465_s14  ;;  %s1586_s14 = sld [smem:[#allocation2 + $0x9e]] }
  0x43   :  { %v632_v29 = vmax.f32 %v630_v21, 0.0  ;;  %v674_v31 = vstv %s1467_s15  ;;  %v651_v32 = vadd.f32 %v649_v24, %v645_v22  ;;  %v652_v33 = vadd.f32 %v650_v25, %v646_v23  ;;  %s1593_s15 = sld [smem:[#allocation2 + $0x11e]] }
  0x44   :  { %v669_v34 = vmul.f32 %v668_v30, %v1357_v14  ;;  %v670_v35 = vmul.f32 %v668_v30, %v1359_v15  ;;  %v675_v37 = vmul.f32 %v674_v31, %v1361_v16  ;;  %v676_v38 = vmul.f32 %v674_v31, %v1363_v17 }
  0x45   :  { %v633_v36 = vadd.f32 %v632_v29, %v631_v28  ;;  %v680_v39 = vstv %s1472_s16  ;;  %v655_v40 = vadd.f32 %v654_v18, %v651_v32  ;;  %v656_v41 = vadd.f32 %v654_v18, %v652_v33  ;;  %s1597_s16 = sld [smem:[#allocation5 + $0x1e]] }
  0x46   :  { %v671_v42 = vadd.f32 %v669_v34, %v665_v26  ;;  %v672_v43 = vadd.f32 %v670_v35, %v666_v27  ;;  %v690_v44 = vstv %s1476_s17  ;;  %v694_v45 = vstv %s1478_s18  ;;  %s1599_s17 = sld [smem:[#allocation2 + $0x1f]] }
  0x47   :  { %634 = vadd.xlane.f32.xlu1 %v633_v36  ;;  %v700_v46 = vstv %s1482_s0  ;;  %v706_v47 = vstv %s1484_s19  ;;  %v657_v48 = vmax.f32 %v655_v40, 0.0  ;;  %v658_v49 = vmax.f32 %v656_v41, 0.0  ;;  %s1608_s18 = sld [smem:[#allocation2 + $0x9f]] }
  0x48   :  { %v677_v50 = vadd.f32 %v675_v37, %v671_v42  ;;  %v678_v51 = vadd.f32 %v676_v38, %v672_v43  ;;  %v691_v52 = vmul.f32 %v690_v44, %v1351_v12  ;;  %v692_v53 = vmul.f32 %v690_v44, %v1353_v13  ;;  %s1610_s0 = sld [smem:[#allocation2 + $0x11f]] }
  0x49   :  { %v695_v54 = vmul.f32 %v694_v45, %v1357_v14  ;;  %v696_v55 = vmul.f32 %v694_v45, %v1359_v15  ;;  %v659_v56 = vadd.f32 %v658_v49, %v657_v48  ;;  %v701_v59 = vmul.f32 %v700_v46, %v1361_v16  ;;  %s1616_s19 = sld [smem:[#allocation5 + $0x1f]] }
  0x4a   :  { %v681_v57 = vadd.f32 %v680_v39, %v677_v50  ;;  %v682_v58 = vadd.f32 %v680_v39, %v678_v51  ;;  %v702_v62 = vmul.f32 %v700_v46, %v1363_v17  ;;  %v716_v63 = vstv %s1495_s20  ;;  %s1620_s20 = sld [smem:[#allocation2]] }
  0x4b   :  { %v697_v60 = vadd.f32 %v695_v54, %v691_v52  ;;  %v698_v61 = vadd.f32 %v696_v55, %v692_v53  ;;  %660 = vadd.xlane.f32.xlu0 %v659_v56  ;;  %v717_v2 = vmul.f32 %v716_v63, %v1351_v12  ;;  %v718_v3 = vmul.f32 %v716_v63, %v1353_v13 }
  0x4c   :  { %v683_v0 = vmax.f32 %v681_v57, 0.0  ;;  %v684_v1 = vmax.f32 %v682_v58, 0.0  ;;  %v720_v6 = vstv %s1502_s21  ;;  %v726_v7 = vstv %s1504_s22  ;;  %s1622_s21 = sld [smem:[#allocation2 + $0x80]] }
  0x4d   :  { %v703_v4 = vadd.f32 %v701_v59, %v697_v60  ;;  %v704_v5 = vadd.f32 %v702_v62, %v698_v61  ;;  %v721_v9 = vmul.f32 %v720_v6, %v1357_v14  ;;  %v722_v10 = vmul.f32 %v720_v6, %v1359_v15  ;;  %s1626_s22 = sld [smem:[#allocation2 + $0x100]] }
  0x4e   :  { %v685_v8 = vadd.f32 %v684_v1, %v683_v0  ;;  %v727_v11 = vmul.f32 %v726_v7, %v1361_v16  ;;  %v728_v20 = vmul.f32 %v726_v7, %v1363_v17  ;;  %v732_v21 = vstv %s1510_s23  ;;  %s1628_s23 = sld [smem:[#allocation5]] }
  0x4f   :  { %v707_v18 = vadd.f32 %v706_v47, %v703_v4  ;;  %v708_v19 = vadd.f32 %v706_v47, %v704_v5  ;;  %v723_v22 = vadd.f32 %v721_v9, %v717_v2  ;;  %v724_v23 = vadd.f32 %v722_v10, %v718_v3 }
  0x50   :  { %686 = vadd.xlane.f32.xlu1 %v685_v8  ;;  %v742_v24 = vstv %s1512_s24  ;;  %v746_v25 = vstv %s1514_s25  ;;  %v752_v35 = vstv %s1521_s26  ;;  %v758_v36 = vstv %s1525_s1  ;;  %s1639_s24 = sld [smem:[#allocation2 + $0x1]] }
  0x51   :  { %v709_v26 = vmax.f32 %v707_v18, 0.0  ;;  %v710_v27 = vmax.f32 %v708_v19, 0.0  ;;  %v743_v28 = vmul.f32 %v742_v24, %v1351_v12  ;;  %v744_v29 = vmul.f32 %v742_v24, %v1353_v13  ;;  %s1646_s25 = sld [smem:[#allocation2 + $0x81]] }
  0x52   :  { %v729_v30 = vadd.f32 %v727_v11, %v723_v22  ;;  %v730_v31 = vadd.f32 %v728_v20, %v724_v23  ;;  %v747_v32 = vmul.f32 %v746_v25, %v1357_v14  ;;  %v748_v33 = vmul.f32 %v746_v25, %v1359_v15  ;;  %s1648_s26 = sld [smem:[#allocation2 + $0x101]] }
  0x53   :  { %v711_v34 = vadd.f32 %v710_v27, %v709_v26  ;;  %v768_v37 = vstv %s1527_s2  ;;  %v753_v42 = vmul.f32 %v752_v35, %v1361_v16  ;;  %v754_v43 = vmul.f32 %v752_v35, %v1363_v17  ;;  %s1654_s1 = sld [smem:[#allocation5 + $0x1]]  ;;  %s1656_s2 = sld [smem:[#allocation2 + $0x2]] }
  0x54   :  { %v733_v38 = vadd.f32 %v732_v21, %v729_v30  ;;  %v734_v39 = vadd.f32 %v732_v21, %v730_v31  ;;  %v749_v40 = vadd.f32 %v747_v32, %v743_v28  ;;  %v750_v41 = vadd.f32 %v748_v33, %v744_v29 }
  0x55   :  { %712 = vadd.xlane.f32.xlu0 %v711_v34  ;;  %v769_v44 = vmul.f32 %v768_v37, %v1351_v12  ;;  %v770_v45 = vmul.f32 %v768_v37, %v1353_v13  ;;  %v772_v48 = vstv %s1536_s27  ;;  %v778_v49 = vstv %s1538_s28  ;;  %s1658_s27 = sld [smem:[#allocation2 + $0x82]] }
  0x56   :  { %v735_v46 = vmax.f32 %v733_v38, 0.0  ;;  %v736_v47 = vmax.f32 %v734_v39, 0.0  ;;  %v755_v50 = vadd.f32 %v753_v42, %v749_v40  ;;  %v756_v51 = vadd.f32 %v754_v43, %v750_v41  ;;  %s1665_s28 = sld [smem:[#allocation2 + $0x102]] }
  0x57   :  { %v773_v52 = vmul.f32 %v772_v48, %v1357_v14  ;;  %v774_v53 = vmul.f32 %v772_v48, %v1359_v15  ;;  %v779_v55 = vmul.f32 %v778_v49, %v1361_v16  ;;  %v780_v56 = vmul.f32 %v778_v49, %v1363_v17 }
  0x58   :  { %v737_v54 = vadd.f32 %v736_v47, %v735_v46  ;;  %v784_v57 = vstv %s1544_s29  ;;  %v759_v58 = vadd.f32 %v758_v36, %v755_v50  ;;  %v760_v59 = vadd.f32 %v758_v36, %v756_v51  ;;  %s1669_s29 = sld [smem:[#allocation5 + $0x2]] }
  0x59   :  { %v775_v60 = vadd.f32 %v773_v52, %v769_v44  ;;  %v776_v61 = vadd.f32 %v774_v53, %v770_v45  ;;  %v794_v62 = vstv %s1548_s30  ;;  %v798_v63 = vstv %s1550_s6  ;;  %s1671_s30 = sld [smem:[#allocation2 + $0x3]] }
  0x5a   :  { %738 = vadd.xlane.f32.xlu1 %v737_v54  ;;  %v804_v0 = vstv %s1554_s7  ;;  %v810_v1 = vstv %s1556_s8  ;;  %v761_v2 = vmax.f32 %v759_v58, 0.0  ;;  %v762_v3 = vmax.f32 %v760_v59, 0.0  ;;  %s1680_s6 = sld [smem:[#allocation2 + $0x83]] }
  0x5b   :  { %v781_v4 = vadd.f32 %v779_v55, %v775_v60  ;;  %v782_v5 = vadd.f32 %v780_v56, %v776_v61  ;;  %v795_v6 = vmul.f32 %v794_v62, %v1351_v12  ;;  %v796_v7 = vmul.f32 %v794_v62, %v1353_v13  ;;  %s1682_s7 = sld [smem:[#allocation2 + $0x103]] }
  0x5c   :  { %v799_v8 = vmul.f32 %v798_v63, %v1357_v14  ;;  %v800_v9 = vmul.f32 %v798_v63, %v1359_v15  ;;  %v763_v10 = vadd.f32 %v762_v3, %v761_v2  ;;  %v805_v19 = vmul.f32 %v804_v0, %v1361_v16  ;;  %s1688_s8 = sld [smem:[#allocation5 + $0x3]] }
  0x5d   :  { %v785_v11 = vadd.f32 %v784_v57, %v781_v4  ;;  %v786_v18 = vadd.f32 %v784_v57, %v782_v5  ;;  %v806_v22 = vmul.f32 %v804_v0, %v1363_v17  ;;  %v820_v23 = vstv %s1567_s9  ;;  %s1692_s9 = sld [smem:[#allocation2 + $0x4]] }
  0x5e   :  { %v801_v20 = vadd.f32 %v799_v8, %v795_v6  ;;  %v802_v21 = vadd.f32 %v800_v9, %v796_v7  ;;  %764 = vadd.xlane.f32.xlu0 %v763_v10  ;;  %v821_v26 = vmul.f32 %v820_v23, %v1351_v12  ;;  %v822_v27 = vmul.f32 %v820_v23, %v1353_v13 }
  0x5f   :  { %v787_v24 = vmax.f32 %v785_v11, 0.0  ;;  %v788_v25 = vmax.f32 %v786_v18, 0.0  ;;  %v824_v30 = vstv %s1574_s10  ;;  %v830_v31 = vstv %s1576_s11  ;;  %s1694_s10 = sld [smem:[#allocation2 + $0x84]] }
  0x60   :  { %v807_v28 = vadd.f32 %v805_v19, %v801_v20  ;;  %v808_v29 = vadd.f32 %v806_v22, %v802_v21  ;;  %v825_v33 = vmul.f32 %v824_v30, %v1357_v14  ;;  %v826_v34 = vmul.f32 %v824_v30, %v1359_v15  ;;  %s1698_s11 = sld [smem:[#allocation2 + $0x104]] }
  0x61   :  { %v789_v32 = vadd.f32 %v788_v25, %v787_v24  ;;  %v831_v35 = vmul.f32 %v830_v31, %v1361_v16  ;;  %v832_v38 = vmul.f32 %v830_v31, %v1363_v17  ;;  %v836_v39 = vstv %s1582_s12  ;;  %s1700_s12 = sld [smem:[#allocation5 + $0x4]] }
  0x62   :  { %v811_v36 = vadd.f32 %v810_v1, %v807_v28  ;;  %v812_v37 = vadd.f32 %v810_v1, %v808_v29  ;;  %v827_v40 = vadd.f32 %v825_v33, %v821_v26  ;;  %v828_v41 = vadd.f32 %v826_v34, %v822_v27 }
  0x63   :  { %790 = vadd.xlane.f32.xlu1 %v789_v32  ;;  %v846_v42 = vstv %s1584_s13  ;;  %v850_v43 = vstv %s1586_s14  ;;  %v856_v53 = vstv %s1593_s15  ;;  %v862_v54 = vstv %s1597_s16  ;;  %s1711_s13 = sld [smem:[#allocation2 + $0x5]] }
  0x64   :  { %v813_v44 = vmax.f32 %v811_v36, 0.0  ;;  %v814_v45 = vmax.f32 %v812_v37, 0.0  ;;  %v847_v46 = vmul.f32 %v846_v42, %v1351_v12  ;;  %v848_v47 = vmul.f32 %v846_v42, %v1353_v13  ;;  %s1718_s14 = sld [smem:[#allocation2 + $0x85]] }
  0x65   :  { %v833_v48 = vadd.f32 %v831_v35, %v827_v40  ;;  %v834_v49 = vadd.f32 %v832_v38, %v828_v41  ;;  %v851_v50 = vmul.f32 %v850_v43, %v1357_v14  ;;  %v852_v51 = vmul.f32 %v850_v43, %v1359_v15  ;;  %s1720_s15 = sld [smem:[#allocation2 + $0x105]] }
  0x66   :  { %v815_v52 = vadd.f32 %v814_v45, %v813_v44  ;;  %v872_v55 = vstv %s1599_s17  ;;  %v857_v60 = vmul.f32 %v856_v53, %v1361_v16  ;;  %v858_v61 = vmul.f32 %v856_v53, %v1363_v17  ;;  %s1726_s16 = sld [smem:[#allocation5 + $0x5]]  ;;  %s1728_s17 = sld [smem:[#allocation2 + $0x6]] }
  0x67   :  { %v837_v56 = vadd.f32 %v836_v39, %v833_v48  ;;  %v838_v57 = vadd.f32 %v836_v39, %v834_v49  ;;  %v853_v58 = vadd.f32 %v851_v50, %v847_v46  ;;  %v854_v59 = vadd.f32 %v852_v51, %v848_v47 }
  0x68   :  { %816 = vadd.xlane.f32.xlu0 %v815_v52  ;;  %v873_v62 = vmul.f32 %v872_v55, %v1351_v12  ;;  %v874_v63 = vmul.f32 %v872_v55, %v1353_v13  ;;  %v876_v2 = vstv %s1608_s18  ;;  %v882_v3 = vstv %s1610_s0  ;;  %s1730_s18 = sld [smem:[#allocation2 + $0x86]] }
  0x69   :  { %v839_v0 = vmax.f32 %v837_v56, 0.0  ;;  %v840_v1 = vmax.f32 %v838_v57, 0.0  ;;  %v859_v4 = vadd.f32 %v857_v60, %v853_v58  ;;  %v860_v5 = vadd.f32 %v858_v61, %v854_v59  ;;  %s1737_s0 = sld [smem:[#allocation2 + $0x106]] }
  0x6a   :  { %v877_v6 = vmul.f32 %v876_v2, %v1357_v14  ;;  %v878_v7 = vmul.f32 %v876_v2, %v1359_v15  ;;  %v883_v9 = vmul.f32 %v882_v3, %v1361_v16  ;;  %v884_v10 = vmul.f32 %v882_v3, %v1363_v17 }
  0x6b   :  { %v841_v8 = vadd.f32 %v840_v1, %v839_v0  ;;  %v888_v11 = vstv %s1616_s19  ;;  %v863_v18 = vadd.f32 %v862_v54, %v859_v4  ;;  %v864_v19 = vadd.f32 %v862_v54, %v860_v5  ;;  %s1741_s19 = sld [smem:[#allocation5 + $0x6]] }
  0x6c   :  { %v879_v20 = vadd.f32 %v877_v6, %v873_v62  ;;  %v880_v21 = vadd.f32 %v878_v7, %v874_v63  ;;  %v65_v22 = vstv %s1620_s20  ;;  %v69_v23 = vstv %s1622_s21  ;;  %s1743_s20 = sld [smem:[#allocation2 + $0x7]] }
  0x6d   :  { %842 = vadd.xlane.f32.xlu1 %v841_v8  ;;  %v75_v24 = vstv %s1626_s22  ;;  %v81_v25 = vstv %s1628_s23  ;;  %v865_v26 = vmax.f32 %v863_v18, 0.0  ;;  %v866_v27 = vmax.f32 %v864_v19, 0.0  ;;  %s1752_s21 = sld [smem:[#allocation2 + $0x87]] }
  0x6e   :  { %v885_v28 = vadd.f32 %v883_v9, %v879_v20  ;;  %v886_v29 = vadd.f32 %v884_v10, %v880_v21  ;;  %v66_v30 = vmul.f32 %v65_v22, %v1351_v12  ;;  %v67_v31 = vmul.f32 %v65_v22, %v1353_v13  ;;  %s1754_s22 = sld [smem:[#allocation2 + $0x107]] }
  0x6f   :  { %v70_v32 = vmul.f32 %v69_v23, %v1357_v14  ;;  %v71_v33 = vmul.f32 %v69_v23, %v1359_v15  ;;  %v867_v34 = vadd.f32 %v866_v27, %v865_v26  ;;  %v76_v37 = vmul.f32 %v75_v24, %v1361_v16  ;;  %s1760_s23 = sld [smem:[#allocation5 + $0x7]] }
  0x70   :  { %v889_v35 = vadd.f32 %v888_v11, %v885_v28  ;;  %v890_v36 = vadd.f32 %v888_v11, %v886_v29  ;;  %v77_v40 = vmul.f32 %v75_v24, %v1363_v17  ;;  %v92_v41 = vstv %s1639_s24  ;;  %s1764_s24 = sld [smem:[#allocation2 + $0x8]] }
  0x71   :  { %v72_v38 = vadd.f32 %v70_v32, %v66_v30  ;;  %v73_v39 = vadd.f32 %v71_v33, %v67_v31  ;;  %868 = vadd.xlane.f32.xlu0 %v867_v34  ;;  %v93_v44 = vmul.f32 %v92_v41, %v1351_v12  ;;  %v94_v45 = vmul.f32 %v92_v41, %v1353_v13 }
  0x72   :  { %v891_v42 = vmax.f32 %v889_v35, 0.0  ;;  %v892_v43 = vmax.f32 %v890_v36, 0.0  ;;  %v96_v48 = vstv %s1646_s25  ;;  %v102_v49 = vstv %s1648_s26  ;;  %s1766_s25 = sld [smem:[#allocation2 + $0x88]] }
  0x73   :  { %v78_v46 = vadd.f32 %v76_v37, %v72_v38  ;;  %v79_v47 = vadd.f32 %v77_v40, %v73_v39  ;;  %v97_v51 = vmul.f32 %v96_v48, %v1357_v14  ;;  %v98_v52 = vmul.f32 %v96_v48, %v1359_v15  ;;  %s1770_s26 = sld [smem:[#allocation2 + $0x108]] }
  0x74   :  { %v893_v50 = vadd.f32 %v892_v43, %v891_v42  ;;  %v103_v53 = vmul.f32 %v102_v49, %v1361_v16  ;;  %v104_v56 = vmul.f32 %v102_v49, %v1363_v17  ;;  %v108_v57 = vstv %s1654_s1  ;;  %s1772_s1 = sld [smem:[#allocation5 + $0x8]] }
  0x75   :  { %v82_v54 = vadd.f32 %v81_v25, %v78_v46  ;;  %v83_v55 = vadd.f32 %v81_v25, %v79_v47  ;;  %v99_v58 = vadd.f32 %v97_v51, %v93_v44  ;;  %v100_v59 = vadd.f32 %v98_v52, %v94_v45 }
  0x76   :  { %894 = vadd.xlane.f32.xlu1 %v893_v50  ;;  %v118_v60 = vstv %s1656_s2  ;;  %v122_v61 = vstv %s1658_s27  ;;  %v128_v7 = vstv %s1665_s28  ;;  %v134_v8 = vstv %s1669_s29  ;;  %s1783_s2 = sld [smem:[#allocation2 + $0x9]] }
  0x77   :  { %v84_v62 = vmax.f32 %v82_v54, 0.0  ;;  %v85_v63 = vmax.f32 %v83_v55, 0.0  ;;  %v119_v0 = vmul.f32 %v118_v60, %v1351_v12  ;;  %v120_v1 = vmul.f32 %v118_v60, %v1353_v13  ;;  %s1790_s27 = sld [smem:[#allocation2 + $0x89]] }
  0x78   :  { %v105_v2 = vadd.f32 %v103_v53, %v99_v58  ;;  %v106_v3 = vadd.f32 %v104_v56, %v100_v59  ;;  %v123_v4 = vmul.f32 %v122_v61, %v1357_v14  ;;  %v124_v5 = vmul.f32 %v122_v61, %v1359_v15  ;;  %s1792_s28 = sld [smem:[#allocation2 + $0x109]] }
  0x79   :  { %v86_v6 = vadd.f32 %v85_v63, %v84_v62  ;;  %v144_v9 = vstv %s1671_s30  ;;  %v129_v20 = vmul.f32 %v128_v7, %v1361_v16  ;;  %v130_v21 = vmul.f32 %v128_v7, %v1363_v17  ;;  %s1798_s29 = sld [smem:[#allocation5 + $0x9]]  ;;  %s1800_s30 = sld [smem:[#allocation2 + $0xa]] }
  0x7a   :  { %v109_v10 = vadd.f32 %v108_v57, %v105_v2  ;;  %v110_v11 = vadd.f32 %v108_v57, %v106_v3  ;;  %v125_v18 = vadd.f32 %v123_v4, %v119_v0  ;;  %v126_v19 = vadd.f32 %v124_v5, %v120_v1 }
  0x7b   :  { %87 = vadd.xlane.f32.xlu0 %v86_v6  ;;  %v145_v22 = vmul.f32 %v144_v9, %v1351_v12  ;;  %v146_v23 = vmul.f32 %v144_v9, %v1353_v13  ;;  %v148_v26 = vstv %s1680_s6  ;;  %v154_v27 = vstv %s1682_s7  ;;  %s1802_s6 = sld [smem:[#allocation2 + $0x8a]] }
  0x7c   :  { %v111_v24 = vmax.f32 %v109_v10, 0.0  ;;  %v112_v25 = vmax.f32 %v110_v11, 0.0  ;;  %v131_v28 = vadd.f32 %v129_v20, %v125_v18  ;;  %v132_v29 = vadd.f32 %v130_v21, %v126_v19  ;;  %s1809_s7 = sld [smem:[#allocation2 + $0x10a]] }
  0x7d   :  { %v149_v30 = vmul.f32 %v148_v26, %v1357_v14  ;;  %v150_v31 = vmul.f32 %v148_v26, %v1359_v15  ;;  %v155_v33 = vmul.f32 %v154_v27, %v1361_v16  ;;  %v156_v34 = vmul.f32 %v154_v27, %v1363_v17 }
  0x7e   :  { %v113_v32 = vadd.f32 %v112_v25, %v111_v24  ;;  %v160_v35 = vstv %s1688_s8  ;;  %v135_v36 = vadd.f32 %v134_v8, %v131_v28  ;;  %v136_v37 = vadd.f32 %v134_v8, %v132_v29  ;;  %s1813_s8 = sld [smem:[#allocation5 + $0xa]] }
  0x7f   :  { %v151_v38 = vadd.f32 %v149_v30, %v145_v22  ;;  %v152_v39 = vadd.f32 %v150_v31, %v146_v23  ;;  %v170_v40 = vstv %s1692_s9  ;;  %v174_v41 = vstv %s1694_s10  ;;  %s1815_s9 = sld [smem:[#allocation2 + $0xb]] }
  0x80   :  { %114 = vadd.xlane.f32.xlu1 %v113_v32  ;;  %v180_v42 = vstv %s1698_s11  ;;  %v186_v43 = vstv %s1700_s12  ;;  %v137_v44 = vmax.f32 %v135_v36, 0.0  ;;  %v138_v45 = vmax.f32 %v136_v37, 0.0  ;;  %s1824_s10 = sld [smem:[#allocation2 + $0x8b]] }
  0x81   :  { %v157_v46 = vadd.f32 %v155_v33, %v151_v38  ;;  %v158_v47 = vadd.f32 %v156_v34, %v152_v39  ;;  %v171_v48 = vmul.f32 %v170_v40, %v1351_v12  ;;  %v172_v49 = vmul.f32 %v170_v40, %v1353_v13  ;;  %s1826_s11 = sld [smem:[#allocation2 + $0x10b]] }
  0x82   :  { %v175_v50 = vmul.f32 %v174_v41, %v1357_v14  ;;  %v176_v51 = vmul.f32 %v174_v41, %v1359_v15  ;;  %v139_v52 = vadd.f32 %v138_v45, %v137_v44  ;;  %v181_v55 = vmul.f32 %v180_v42, %v1361_v16  ;;  %s1832_s12 = sld [smem:[#allocation5 + $0xb]] }
  0x83   :  { %v161_v53 = vadd.f32 %v160_v35, %v157_v46  ;;  %v162_v54 = vadd.f32 %v160_v35, %v158_v47  ;;  %v182_v58 = vmul.f32 %v180_v42, %v1363_v17  ;;  %v196_v59 = vstv %s1711_s13  ;;  %s1836_s13 = sld [smem:[#allocation2 + $0xc]] }
  0x84   :  { %v177_v56 = vadd.f32 %v175_v50, %v171_v48  ;;  %v178_v57 = vadd.f32 %v176_v51, %v172_v49  ;;  %140 = vadd.xlane.f32.xlu0 %v139_v52  ;;  %v197_v62 = vmul.f32 %v196_v59, %v1351_v12  ;;  %v198_v63 = vmul.f32 %v196_v59, %v1353_v13 }
  0x85   :  { %v163_v60 = vmax.f32 %v161_v53, 0.0  ;;  %v164_v61 = vmax.f32 %v162_v54, 0.0  ;;  %v200_v2 = vstv %s1718_s14  ;;  %v206_v3 = vstv %s1720_s15  ;;  %s1838_s14 = sld [smem:[#allocation2 + $0x8c]] }
  0x86   :  { %v183_v0 = vadd.f32 %v181_v55, %v177_v56  ;;  %v184_v1 = vadd.f32 %v182_v58, %v178_v57  ;;  %v201_v5 = vmul.f32 %v200_v2, %v1357_v14  ;;  %v202_v6 = vmul.f32 %v200_v2, %v1359_v15  ;;  %s1842_s15 = sld [smem:[#allocation2 + $0x10c]] }
  0x87   :  { %v165_v4 = vadd.f32 %v164_v61, %v163_v60  ;;  %v207_v7 = vmul.f32 %v206_v3, %v1361_v16  ;;  %v208_v10 = vmul.f32 %v206_v3, %v1363_v17  ;;  %v212_v11 = vstv %s1726_s16  ;;  %s1844_s16 = sld [smem:[#allocation5 + $0xc]] }
  0x88   :  { %v187_v8 = vadd.f32 %v186_v43, %v183_v0  ;;  %v188_v9 = vadd.f32 %v186_v43, %v184_v1  ;;  %v203_v18 = vadd.f32 %v201_v5, %v197_v62  ;;  %v204_v19 = vadd.f32 %v202_v6, %v198_v63 }
  0x89   :  { %166 = vadd.xlane.f32.xlu1 %v165_v4  ;;  %v222_v20 = vstv %s1728_s17  ;;  %v226_v21 = vstv %s1730_s18  ;;  %v232_v31 = vstv %s1737_s0  ;;  %v238_v32 = vstv %s1741_s19  ;;  %s1855_s17 = sld [smem:[#allocation2 + $0xd]] }
  0x8a   :  { %v189_v22 = vmax.f32 %v187_v8, 0.0  ;;  %v190_v23 = vmax.f32 %v188_v9, 0.0  ;;  %v223_v24 = vmul.f32 %v222_v20, %v1351_v12  ;;  %v224_v25 = vmul.f32 %v222_v20, %v1353_v13  ;;  %s1862_s18 = sld [smem:[#allocation2 + $0x8d]] }
  0x8b   :  { %v209_v26 = vadd.f32 %v207_v7, %v203_v18  ;;  %v210_v27 = vadd.f32 %v208_v10, %v204_v19  ;;  %v227_v28 = vmul.f32 %v226_v21, %v1357_v14  ;;  %v228_v29 = vmul.f32 %v226_v21, %v1359_v15  ;;  %s1864_s0 = sld [smem:[#allocation2 + $0x10d]] }
  0x8c   :  { %v191_v30 = vadd.f32 %v190_v23, %v189_v22  ;;  %v248_v33 = vstv %s1743_s20  ;;  %v233_v38 = vmul.f32 %v232_v31, %v1361_v16  ;;  %v234_v39 = vmul.f32 %v232_v31, %v1363_v17  ;;  %s1870_s19 = sld [smem:[#allocation5 + $0xd]]  ;;  %s1872_s20 = sld [smem:[#allocation2 + $0xe]] }
  0x8d   :  { %v213_v34 = vadd.f32 %v212_v11, %v209_v26  ;;  %v214_v35 = vadd.f32 %v212_v11, %v210_v27  ;;  %v229_v36 = vadd.f32 %v227_v28, %v223_v24  ;;  %v230_v37 = vadd.f32 %v228_v29, %v224_v25 }
  0x8e   :  { %192 = vadd.xlane.f32.xlu0 %v191_v30  ;;  %v249_v40 = vmul.f32 %v248_v33, %v1351_v12  ;;  %v250_v41 = vmul.f32 %v248_v33, %v1353_v13  ;;  %v252_v44 = vstv %s1752_s21  ;;  %v258_v45 = vstv %s1754_s22  ;;  %s1874_s21 = sld [smem:[#allocation2 + $0x8e]] }
  0x8f   :  { %v215_v42 = vmax.f32 %v213_v34, 0.0  ;;  %v216_v43 = vmax.f32 %v214_v35, 0.0  ;;  %v235_v46 = vadd.f32 %v233_v38, %v229_v36  ;;  %v236_v47 = vadd.f32 %v234_v39, %v230_v37  ;;  %s1881_s22 = sld [smem:[#allocation2 + $0x10e]] }
  0x90   :  { %v253_v48 = vmul.f32 %v252_v44, %v1357_v14  ;;  %v254_v49 = vmul.f32 %v252_v44, %v1359_v15  ;;  %v259_v51 = vmul.f32 %v258_v45, %v1361_v16  ;;  %v260_v52 = vmul.f32 %v258_v45, %v1363_v17 }
  0x91   :  { %v217_v50 = vadd.f32 %v216_v43, %v215_v42  ;;  %v264_v53 = vstv %s1760_s23  ;;  %v239_v54 = vadd.f32 %v238_v32, %v235_v46  ;;  %v240_v55 = vadd.f32 %v238_v32, %v236_v47  ;;  %s1885_s23 = sld [smem:[#allocation5 + $0xe]] }
  0x92   :  { %v255_v56 = vadd.f32 %v253_v48, %v249_v40  ;;  %v256_v57 = vadd.f32 %v254_v49, %v250_v41  ;;  %v274_v58 = vstv %s1764_s24  ;;  %v278_v59 = vstv %s1766_s25  ;;  %s1887_s24 = sld [smem:[#allocation2 + $0xf]] }
  0x93   :  { %218 = vadd.xlane.f32.xlu1 %v217_v50  ;;  %v284_v60 = vstv %s1770_s26  ;;  %v290_v61 = vstv %s1772_s1  ;;  %v241_v62 = vmax.f32 %v239_v54, 0.0  ;;  %v242_v63 = vmax.f32 %v240_v55, 0.0  ;;  %s1896_s25 = sld [smem:[#allocation2 + $0x8f]] }
  0x94   :  { %v261_v0 = vadd.f32 %v259_v51, %v255_v56  ;;  %v262_v1 = vadd.f32 %v260_v52, %v256_v57  ;;  %v275_v2 = vmul.f32 %v274_v58, %v1351_v12  ;;  %v276_v3 = vmul.f32 %v274_v58, %v1353_v13  ;;  %s1898_s26 = sld [smem:[#allocation2 + $0x10f]] }
  0x95   :  { %v279_v4 = vmul.f32 %v278_v59, %v1357_v14  ;;  %v280_v5 = vmul.f32 %v278_v59, %v1359_v15  ;;  %v243_v6 = vadd.f32 %v242_v63, %v241_v62  ;;  %v285_v9 = vmul.f32 %v284_v60, %v1361_v16  ;;  %s1908_s1 = sld [smem:[#allocation5 + $0xf]] }
  0x96   :  { %v265_v7 = vadd.f32 %v264_v53, %v261_v0  ;;  %v266_v8 = vadd.f32 %v264_v53, %v262_v1  ;;  %v286_v18 = vmul.f32 %v284_v60, %v1363_v17  ;;  %v300_v19 = vstv %s1783_s2 }
  0x97   :  { %v281_v10 = vadd.f32 %v279_v4, %v275_v2  ;;  %v282_v11 = vadd.f32 %v280_v5, %v276_v3  ;;  %244 = vadd.xlane.f32.xlu0 %v243_v6  ;;  %v301_v22 = vmul.f32 %v300_v19, %v1351_v12  ;;  %v302_v23 = vmul.f32 %v300_v19, %v1353_v13 }
  0x98   :  { %v267_v20 = vmax.f32 %v265_v7, 0.0  ;;  %v268_v21 = vmax.f32 %v266_v8, 0.0  ;;  %v304_v26 = vstv %s1790_s27  ;;  %v310_v27 = vstv %s1792_s28 }
  0x99   :  { %v287_v24 = vadd.f32 %v285_v9, %v281_v10  ;;  %v288_v25 = vadd.f32 %v286_v18, %v282_v11  ;;  %v305_v29 = vmul.f32 %v304_v26, %v1357_v14  ;;  %v306_v30 = vmul.f32 %v304_v26, %v1359_v15 }
  0x9a   :  { %v269_v28 = vadd.f32 %v268_v21, %v267_v20  ;;  %v311_v31 = vmul.f32 %v310_v27, %v1361_v16  ;;  %v312_v34 = vmul.f32 %v310_v27, %v1363_v17  ;;  %v316_v35 = vstv %s1798_s29 }
  0x9b   :  { %v291_v32 = vadd.f32 %v290_v61, %v287_v24  ;;  %v292_v33 = vadd.f32 %v290_v61, %v288_v25  ;;  %v307_v36 = vadd.f32 %v305_v29, %v301_v22  ;;  %v308_v37 = vadd.f32 %v306_v30, %v302_v23 }
  0x9c   :  { %270 = vadd.xlane.f32.xlu1 %v269_v28  ;;  %v326_v38 = vstv %s1800_s30  ;;  %v330_v39 = vstv %s1802_s6  ;;  %v336_v49 = vstv %s1809_s7  ;;  %v342_v50 = vstv %s1813_s8 }
  0x9d   :  { %v293_v40 = vmax.f32 %v291_v32, 0.0  ;;  %v294_v41 = vmax.f32 %v292_v33, 0.0  ;;  %v327_v42 = vmul.f32 %v326_v38, %v1351_v12  ;;  %v328_v43 = vmul.f32 %v326_v38, %v1353_v13 }
  0x9e   :  { %v313_v44 = vadd.f32 %v311_v31, %v307_v36  ;;  %v314_v45 = vadd.f32 %v312_v34, %v308_v37  ;;  %v331_v46 = vmul.f32 %v330_v39, %v1357_v14  ;;  %v332_v47 = vmul.f32 %v330_v39, %v1359_v15 }
  0x9f   :  { %v295_v48 = vadd.f32 %v294_v41, %v293_v40  ;;  %v352_v51 = vstv %s1815_s9  ;;  %v337_v56 = vmul.f32 %v336_v49, %v1361_v16  ;;  %v338_v57 = vmul.f32 %v336_v49, %v1363_v17 }
  0xa0   :  { %v317_v52 = vadd.f32 %v316_v35, %v313_v44  ;;  %v318_v53 = vadd.f32 %v316_v35, %v314_v45  ;;  %v333_v54 = vadd.f32 %v331_v46, %v327_v42  ;;  %v334_v55 = vadd.f32 %v332_v47, %v328_v43 }
  0xa1   :  { %296 = vadd.xlane.f32.xlu0 %v295_v48  ;;  %v353_v58 = vmul.f32 %v352_v51, %v1351_v12  ;;  %v354_v59 = vmul.f32 %v352_v51, %v1353_v13  ;;  %v356_v62 = vstv %s1824_s10  ;;  %v362_v63 = vstv %s1826_s11  ;;  %s1294_s11 = smov 112  }
  0xa2   :  { %v319_v60 = vmax.f32 %v317_v52, 0.0  ;;  %v320_v61 = vmax.f32 %v318_v53, 0.0  ;;  %v339_v0 = vadd.f32 %v337_v56, %v333_v54  ;;  %v340_v1 = vadd.f32 %v338_v57, %v334_v55 }
  0xa3   :  { %v357_v2 = vmul.f32 %v356_v62, %v1357_v14  ;;  %v358_v3 = vmul.f32 %v356_v62, %v1359_v15  ;;  %v363_v5 = vmul.f32 %v362_v63, %v1361_v16  ;;  %v364_v6 = vmul.f32 %v362_v63, %v1363_v17 }
  0xa4   :  { %v321_v4 = vadd.f32 %v320_v61, %v319_v60  ;;  %v368_v7 = vstv %s1832_s12  ;;  %v343_v8 = vadd.f32 %v342_v50, %v339_v0  ;;  %v344_v9 = vadd.f32 %v342_v50, %v340_v1  ;;  %s1296_s12 = smov [#allocation7]  }
  0xa5   :  { %v359_v10 = vadd.f32 %v357_v2, %v353_v58  ;;  %v360_v11 = vadd.f32 %v358_v3, %v354_v59  ;;  %v378_v18 = vstv %s1836_s13  ;;  %v382_v19 = vstv %s1838_s14  ;;  %s1063_s13 = sshll.u32 %s1296_s12, 4  ;;  %s1064_s13 = int_to_ptr.vmem [resolvable:$true] %s1063_s13 }
  0xa6   :  { %322 = vadd.xlane.f32.xlu1 %v321_v4  ;;  %v388_v20 = vstv %s1842_s15  ;;  %v394_v21 = vstv %s1844_s16  ;;  %v345_v22 = vmax.f32 %v343_v8, 0.0  ;;  %v346_v23 = vmax.f32 %v344_v9, 0.0  ;;  %s1260_s14 = scalar_lea.vmem %s1064_s13, 128  ;;  %p1265_p11 = scmp.lt.s32.totalorder %s1064_s13, %s1064_s13 }
  0xa7   :  { %v365_v24 = vadd.f32 %v363_v5, %v359_v10  ;;  %v366_v25 = vadd.f32 %v364_v6, %v360_v11  ;;  %v379_v26 = vmul.f32 %v378_v18, %v1351_v12  ;;  %v380_v27 = vmul.f32 %v378_v18, %v1353_v13  ;;  %p1261_p10 = scmp.ne.s32.totalorder %s1064_s13, %s1260_s14  ;;  %p1266_p12 = scmp.lt.s32.totalorder %s1260_s14, %s1260_s14 }
  0xa8   :  { %v383_v28 = vmul.f32 %v382_v19, %v1357_v14  ;;  %v384_v29 = vmul.f32 %v382_v19, %v1359_v15  ;;  %v347_v30 = vadd.f32 %v346_v23, %v345_v22  ;;  %v389_v33 = vmul.f32 %v388_v20, %v1361_v16 }
  0xa9   :  { %v369_v31 = vadd.f32 %v368_v7, %v365_v24  ;;  %v370_v32 = vadd.f32 %v368_v7, %v366_v25  ;;  %v390_v36 = vmul.f32 %v388_v20, %v1363_v17  ;;  %v404_v37 = vstv %s1855_s17  ;;  %p1267_p13 = por %p1266_p12, %p1265_p11 }
  0xaa   :  { %v385_v34 = vadd.f32 %v383_v28, %v379_v26  ;;  %v386_v35 = vadd.f32 %v384_v29, %v380_v27  ;;  %348 = vadd.xlane.f32.xlu0 %v347_v30  ;;  %v405_v40 = vmul.f32 %v404_v37, %v1351_v12  ;;  %v406_v41 = vmul.f32 %v404_v37, %v1353_v13 }
  0xab   :  { %v371_v38 = vmax.f32 %v369_v31, 0.0  ;;  %v372_v39 = vmax.f32 %v370_v32, 0.0  ;;  %v408_v44 = vstv %s1862_s18  ;;  %v414_v45 = vstv %s1864_s0  ;;  %p1268_p0 = pnand %p1267_p13, %p1261_p10 }
  0xac   :  { %v391_v42 = vadd.f32 %v389_v33, %v385_v34  ;;  %v392_v43 = vadd.f32 %v390_v36, %v386_v35  ;;  %v409_v47 = vmul.f32 %v408_v44, %v1357_v14  ;;  %v410_v48 = vmul.f32 %v408_v44, %v1359_v15 }
  0xad   :  { %v373_v46 = vadd.f32 %v372_v39, %v371_v38  ;;  %v415_v49 = vmul.f32 %v414_v45, %v1361_v16  ;;  %v416_v52 = vmul.f32 %v414_v45, %v1363_v17  ;;  %v420_v53 = vstv %s1870_s19  ;;  %v951_v45 = vld [vmem:[%s1987_s3 + $0x18] sm:$0xff] }
  0xae   :  { %v395_v50 = vadd.f32 %v394_v21, %v391_v42  ;;  %v396_v51 = vadd.f32 %v394_v21, %v392_v43  ;;  %v411_v54 = vadd.f32 %v409_v47, %v405_v40  ;;  %v412_v55 = vadd.f32 %v410_v48, %v406_v41  ;;  %v950_v42 = vld [vmem:[%s1987_s3 + $0x10] sm:$0xff] }
  0xaf   :  { %374 = vadd.xlane.f32.xlu1 %v373_v46  ;;  %v430_v56 = vstv %s1872_s20  ;;  %v434_v57 = vstv %s1874_s21  ;;  %v440_v3 = vstv %s1881_s22  ;;  %v446_v4 = vstv %s1885_s23 }
  0xb0   :  { %v397_v58 = vmax.f32 %v395_v50, 0.0  ;;  %v398_v59 = vmax.f32 %v396_v51, 0.0  ;;  %v431_v60 = vmul.f32 %v430_v56, %v1351_v12  ;;  %v432_v61 = vmul.f32 %v430_v56, %v1353_v13 }
  0xb1   :  { %v417_v62 = vadd.f32 %v415_v49, %v411_v54  ;;  %v418_v63 = vadd.f32 %v416_v52, %v412_v55  ;;  %v435_v0 = vmul.f32 %v434_v57, %v1357_v14  ;;  %v436_v1 = vmul.f32 %v434_v57, %v1359_v15 }
  0xb2   :  { %v399_v2 = vadd.f32 %v398_v59, %v397_v58  ;;  %v456_v5 = vstv %s1887_s24  ;;  %v441_v10 = vmul.f32 %v440_v3, %v1361_v16  ;;  %v442_v11 = vmul.f32 %v440_v3, %v1363_v17 }
  0xb3   :  { %v421_v6 = vadd.f32 %v420_v53, %v417_v62  ;;  %v422_v7 = vadd.f32 %v420_v53, %v418_v63  ;;  %v437_v8 = vadd.f32 %v435_v0, %v431_v60  ;;  %v438_v9 = vadd.f32 %v436_v1, %v432_v61 }
  0xb4   :  { %400 = vadd.xlane.f32.xlu0 %v399_v2  ;;  %v457_v18 = vmul.f32 %v456_v5, %v1351_v12  ;;  %v458_v19 = vmul.f32 %v456_v5, %v1353_v13  ;;  %v460_v22 = vstv %s1896_s25  ;;  %v466_v23 = vstv %s1898_s26 }
  0xb5   :  { %v423_v20 = vmax.f32 %v421_v6, 0.0  ;;  %v424_v21 = vmax.f32 %v422_v7, 0.0  ;;  %v443_v24 = vadd.f32 %v441_v10, %v437_v8  ;;  %v444_v25 = vadd.f32 %v442_v11, %v438_v9 }
  0xb6   :  { %v461_v26 = vmul.f32 %v460_v22, %v1357_v14  ;;  %v462_v27 = vmul.f32 %v460_v22, %v1359_v15  ;;  %v467_v29 = vmul.f32 %v466_v23, %v1361_v16  ;;  %v468_v30 = vmul.f32 %v466_v23, %v1363_v17  ;;  %v948_v16 = vld [vmem:[%s1987_s3] sm:$0xff]  ;;  %v949_v17 = vld [vmem:[%s1987_s3 + $0x8] sm:$0xff]  ;;  %s1293_s3 = smov 16  }
  0xb7   :  { %v425_v28 = vadd.f32 %v424_v21, %v423_v20  ;;  %v447_v31 = vadd.f32 %v446_v4, %v443_v24  ;;  %v448_v12 = vadd.f32 %v446_v4, %v444_v25  ;;  %v472_v33 = vstv %s1908_s1 }
  0xb8   :  { %v463_v32 = vadd.f32 %v461_v26, %v457_v18  ;;  %v464_v13 = vadd.f32 %v462_v27, %v458_v19  ;;  %v1290_v43 = vmov 0.0|0.0   ;;  %v1218_v44 = vpack.c.bf16 %v949_v17, %v948_v16 }
  0xb9   :  { %426 = vadd.xlane.f32.xlu1 %v425_v28  ;;  %v449_v34 = vmax.f32 %v447_v31, 0.0  ;;  %v450_v35 = vmax.f32 %v448_v12, 0.0  ;;  %1217 = vmatprep.subr.bf16.mxu0 %v1290_v43  ;;  %v1221_v46 = vpack.c.bf16 %v951_v45, %v950_v42  ;;  %v1292_v23 = vmov 0.0  }
  0xba   :  { %v469_v36 = vadd.f32 %v467_v29, %v463_v32  ;;  %v470_v37 = vadd.f32 %v468_v30, %v464_v13  ;;  %1219 = vmatpush3.bf16.msra.mxu0 %v1218_v44  ;;  %1214 = vmatprep.mubr.msk.f32.mxu0 %vm1291_vm10, %v1292_v23  ;;  %vm919_vm12 = vcmask 97280   ;;  %vm921_vm13 = vcmask 105472  }
  0xbb   :  { %v451_v38 = vadd.f32 %v450_v35, %v449_v34  ;;  %1220 = vmatprep.subr.bf16.mxu0 %v1290_v43  ;;  %vm923_vm14 = vcmask 113664   ;;  %vm925_vm15 = vcmask 121856  }
  0xbc   :  { %v473_v39 = vadd.f32 %v472_v33, %v469_v36  ;;  %v474_v14 = vadd.f32 %v472_v33, %v470_v37 }
  0xbd   :  { %452 = vadd.xlane.f32.xlu0 %v451_v38 }
  0xbe   :  { %v475_v15 = vmax.f32 %v473_v39, 0.0  ;;  %v476_v40 = vmax.f32 %v474_v14, 0.0  ;;  %v505_v47 = vpop.xlane.xlu0 %504  ;;  %1222 = vmatpush3.bf16.msra.mxu0 %v1221_v46 }
  0xbf   :  { %v557_v48 = vpop.xlane.xlu1 %556  ;;  %v506_v54 = vmul.f32 0.00390625, %v505_v47 }
  0xc0   :  { %v477_v41 = vadd.f32 %v476_v40, %v475_v15  ;;  %v558_v57 = vmul.f32 0.00390625, %v557_v48 }
  0xc2   :  { %478 = vadd.xlane.f32.xlu1 %v477_v41 }
  0xc6   :  { %v531_v49 = vpop.xlane.xlu0 %530 }
  0xc7   :  { %v532_v52 = vmul.f32 0.00390625, %v531_v49 }
  0xc9   :  { %v927_v55 = vsel %vm897_vm0, %v506_v54, %v532_v52 }
  0xca   :  { %v583_v50 = vpop.xlane.xlu1 %582  ;;  %v928_v59 = vsel %vm899_vm1, %v927_v55, %v558_v57 }
  0xcb   :  { %v584_v58 = vmul.f32 0.00390625, %v583_v50 }
  0xcd   :  { %v929_v62 = vsel %vm901_vm2, %v928_v59, %v584_v58 }
  0xcf   :  { %v609_v51 = vpop.xlane.xlu0 %608 }
  0xd0   :  { %v610_v61 = vmul.f32 0.00390625, %v609_v51 }
  0xd2   :  { %v930_v1 = vsel %vm903_vm3, %v929_v62, %v610_v61 }
  0xd4   :  { %v635_v53 = vpop.xlane.xlu1 %634 }
  0xd5   :  { %v636_v0 = vmul.f32 0.00390625, %v635_v53 }
  0xd7   :  { %v931_v4 = vsel %vm905_vm4, %v930_v1, %v636_v0 }
  0xd8   :  { %v661_v56 = vpop.xlane.xlu0 %660 }
  0xd9   :  { %v662_v2 = vmul.f32 0.00390625, %v661_v56 }
  0xdb   :  { %v932_v7 = vsel %vm907_vm5, %v931_v4, %v662_v2 }
  0xdd   :  { %v687_v60 = vpop.xlane.xlu1 %686 }
  0xde   :  { %v688_v5 = vmul.f32 0.00390625, %v687_v60 }
  0xe0   :  { %v933_v10 = vsel %vm909_vm6, %v932_v7, %v688_v5 }
  0xe2   :  { %v713_v63 = vpop.xlane.xlu0 %712 }
  0xe3   :  { %v714_v8 = vmul.f32 0.00390625, %v713_v63 }
  0xe5   :  { %v934_v18 = vsel %vm911_vm7, %v933_v10, %v714_v8 }
  0xe7   :  { %v739_v3 = vpop.xlane.xlu1 %738 }
  0xe8   :  { %v740_v11 = vmul.f32 0.00390625, %v739_v3 }
  0xea   :  { %v935_v21 = vsel %vm913_vm8, %v934_v18, %v740_v11 }
  0xeb   :  { %v765_v6 = vpop.xlane.xlu0 %764 }
  0xec   :  { %v766_v19 = vmul.f32 0.00390625, %v765_v6 }
  0xee   :  { %v936_v24 = vsel %vm915_vm9, %v935_v21, %v766_v19 }
  0xf0   :  { %v791_v9 = vpop.xlane.xlu1 %790 }
  0xf1   :  { %v792_v22 = vmul.f32 0.00390625, %v791_v9 }
  0xf3   :  { %v937_v27 = vsel %vm917_vm11, %v936_v24, %v792_v22  ;;  %v1199_v22 = vld [vmem:[%s1988_s4] ss:$0 sm:$0xff]  ;;  %s1295_s4 = smov 8  }
  0xf5   :  { %v817_v20 = vpop.xlane.xlu0 %816 }
  0xf6   :  { %v818_v25 = vmul.f32 0.00390625, %v817_v20 }
  0xf8   :  { %v938_v29 = vsel %vm919_vm12, %v937_v27, %v818_v25 }
  0xfa   :  { %v843_v26 = vpop.xlane.xlu1 %842 }
  0xfb   :  { %v844_v28 = vmul.f32 0.00390625, %v843_v26 }
  0xfd   :  { %v939_v12 = vsel %vm921_vm13, %v938_v29, %v844_v28 }
  0xfe   :  { %v869_v30 = vpop.xlane.xlu0 %868 }
  0xff   :  { %v870_v31 = vmul.f32 0.00390625, %v869_v30 }
 0x101   :  { %v940_v13 = vsel %vm923_vm14, %v939_v12, %v870_v31 }
 0x103   :  { %v895_v32 = vpop.xlane.xlu1 %894 }
 0x104   :  { %v896_v33 = vmul.f32 0.00390625, %v895_v32 }
 0x106   :  { %v941_v34 = vsel %vm925_vm15, %v940_v13, %v896_v33 }
 0x107   :  { %943 = vrot.lane.b32.xlu0 %v941_v34, %s1293_s3 }
 0x108   :  { %v88_v35 = vpop.xlane.xlu0 %87 }
 0x109   :  { %v90_v37 = vmul.f32 0.00390625, %v88_v35 }
 0x10d   :  { %v115_v36 = vpop.xlane.xlu1 %114 }
 0x10e   :  { %v116_v38 = vmul.f32 0.00390625, %v115_v36 }
 0x110   :  { %v898_v40 = vsel %vm897_vm0, %v90_v37, %v116_v38  ;;  %vm946_vm0 = vcmask 130048  }
 0x111   :  { %v141_v39 = vpop.xlane.xlu0 %140 }
 0x112   :  { %v142_v14 = vmul.f32 0.00390625, %v141_v39 }
 0x114   :  { %v900_v17 = vsel %vm899_vm1, %v898_v40, %v142_v14  ;;  %vm959_vm1 = vcmask 261120  }
 0x116   :  { %v167_v15 = vpop.xlane.xlu1 %166 }
 0x117   :  { %v168_v41 = vmul.f32 0.00390625, %v167_v15 }
 0x119   :  { %v902_v44 = vsel %vm901_vm2, %v900_v17, %v168_v41  ;;  %vm1033_vm2 = vcmask 195712  }
 0x11b   :  { %v193_v16 = vpop.xlane.xlu0 %192 }
 0x11c   :  { %v194_v42 = vmul.f32 0.00390625, %v193_v16 }
 0x11e   :  { %v904_v47 = vsel %vm903_vm3, %v902_v44, %v194_v42  ;;  %vm1053_vm3 = vcmask 195584  }
 0x120   :  { %v219_v43 = vpop.xlane.xlu1 %218 }
 0x121   :  { %v220_v45 = vmul.f32 0.00390625, %v219_v43 }
 0x123   :  { %v906_v50 = vsel %vm905_vm4, %v904_v47, %v220_v45 }
 0x124   :  { %v245_v46 = vpop.xlane.xlu0 %244 }
 0x125   :  { %v246_v48 = vmul.f32 0.00390625, %v245_v46 }
 0x127   :  { %v908_v53 = vsel %vm907_vm5, %v906_v50, %v246_v48 }
 0x129   :  { %v271_v49 = vpop.xlane.xlu1 %270 }
 0x12a   :  { %v272_v51 = vmul.f32 0.00390625, %v271_v49 }
 0x12c   :  { %v910_v56 = vsel %vm909_vm6, %v908_v53, %v272_v51 }
 0x12e   :  { %v297_v52 = vpop.xlane.xlu0 %296 }
 0x12f   :  { %v298_v54 = vmul.f32 0.00390625, %v297_v52 }
 0x131   :  { %v912_v59 = vsel %vm911_vm7, %v910_v56, %v298_v54 }
 0x133   :  { %v323_v55 = vpop.xlane.xlu1 %322 }
 0x134   :  { %v324_v57 = vmul.f32 0.00390625, %v323_v55 }
 0x136   :  { %v914_v62 = vsel %vm913_vm8, %v912_v59, %v324_v57 }
 0x137   :  { %v349_v58 = vpop.xlane.xlu0 %348 }
 0x138   :  { %v350_v60 = vmul.f32 0.00390625, %v349_v58 }
 0x13a   :  { %v916_v1 = vsel %vm915_vm9, %v914_v62, %v350_v60 }
 0x13c   :  { %v375_v61 = vpop.xlane.xlu1 %374 }
 0x13d   :  { %v376_v63 = vmul.f32 0.00390625, %v375_v61 }
 0x13f   :  { %v918_v4 = vsel %vm917_vm11, %v916_v1, %v376_v63 }
 0x141   :  { %v401_v0 = vpop.xlane.xlu0 %400 }
 0x142   :  { %v402_v2 = vmul.f32 0.00390625, %v401_v0 }
 0x144   :  { %v920_v7 = vsel %vm919_vm12, %v918_v4, %v402_v2 }
 0x146   :  { %v427_v3 = vpop.xlane.xlu1 %426 }
 0x147   :  { %v428_v5 = vmul.f32 0.00390625, %v427_v3 }
 0x149   :  { %v922_v10 = vsel %vm921_vm13, %v920_v7, %v428_v5 }
 0x14a   :  { %v453_v6 = vpop.xlane.xlu0 %452 }
 0x14b   :  { %v454_v8 = vmul.f32 0.00390625, %v453_v6 }
 0x14d   :  { %v924_v18 = vsel %vm923_vm14, %v922_v10, %v454_v8 }
 0x14f   :  { %v479_v9 = vpop.xlane.xlu1 %478 }
 0x150   :  { %v480_v11 = vmul.f32 0.00390625, %v479_v9 }
 0x152   :  { %v926_v19 = vsel %vm925_vm15, %v924_v18, %v480_v11 }
 0x179   :  { %v944_v20 = vpop.permute.xlu0 %943 }
 0x17a   :  { %v947_v21 = vsel %vm946_vm0, %v926_v19, %v944_v20 }
 0x17b   :  { %1215 = vmatmul.mubr.msk.f32.vlgmr.msra.gmra.mrb[0].mxu0 %vm959_vm1, %v947_v21 }
 0x24e   :  { %v1029_v23 = vpop.f32.mrb[0].mxu0 }
 0x24f   :  { %v1030_v24 = vadd.f32 %v1199_v22, %v1029_v23  ;;  %v1216_v25 = vpop.f32.mrb[1].mxu0 }
 0x251   :  { %v1034_v26 = vsel %vm1033_vm2, %v1030_v24, -inf }
 0x252   :  { %1035 = vmax.xlane.f32.xlu1 %v1034_v26 }
 0x2df   :  { %v1036_v27 = vpop.xlane.xlu1 %1035 }
 0x2e0   :  { %v1037_v28 = vsub.f32 %v1030_v24, %v1036_v27 }
 0x2e2   :  { %v1038_v29 = vmul.f32 1.442695, %v1037_v28 }
 0x2e4   :  { %1232 = vpow2.f32 %v1038_v29 }
 0x2ee   :  { %v1233_v30 = vpop.eup %1232 }
 0x2ef   :  { %1041 = vrot.lane.b32.xlu1 %v1233_v30, %s1294_s11 }
 0x361   :  { %v1042_v31 = vpop.permute.xlu1 %1041 }
 0x362   :  { %v1044_v12 = vsel %vm911_vm7, %v1042_v31, 0.0 }
 0x363   :  { %1045 = vadd.xlane.f32.xlu1 %v1044_v12 }
 0x3f0   :  { %v1046_v32 = vpop.xlane.xlu1 %1045 }
 0x3f1   :  { %1234 = vrcp.f32 %v1046_v32 }
 0x3fb   :  { %v1235_v13 = vpop.eup %1234 }
 0x3fc   :  { %v1048_v33 = vmul.f32 %v1235_v13, %v1233_v30 }
 0x3fe   :  { %1050 = vrot.lane.b32.xlu0 %v1048_v33, %s1295_s4 }
 0x470   :  { %v1051_v34 = vpop.permute.xlu0 %1050 }
 0x471   :  { %v1054_v35 = vsel %vm1053_vm3, %v1030_v24, %v1051_v34 }
 0x472   :  { %v1055_v36 = vsel %vm959_vm1, %v1054_v35, 0.0 }
 0x473   :  { %1056 = vst [vmem:[#allocation7] sm:$0xff] %v1055_v36 }
 0x474   :  { %1271 = shalt.err (!%p1268_p0)
}
 0x475   :  { %s1272_s17 = scalar_lea.hbm %s1989_s5, 128 }
 0x476   :  { %p1273_p1 = scmp.ne.s32.totalorder %s1989_s5, %s1272_s17  ;;  %p1276_p2 = scmp.lt.u32.totalorder %s1272_s17, %s1989_s5 }
 0x478   :  { %p1278_p3 = pnand %p1276_p2, %p1273_p1 }
 0x47a   :  { %1281 = shalt.err (!%p1278_p3)
}
 0x47b   :  { %1066 = dma.vmem_to_hbm [thread:$0]  %s1064_s13, 128, %s1989_s5, [#allocation3]  }
 0x47c   :  { %1286 = dma.done.wait [#allocation3], 128  }
 0x47d   :  { %1287 = vsyncadd [#allocation3], 4294967168 }
 0x47e   :  { %1070 = vsyncpa [#allocation3], 1 }
 0x47f   :  { %1071 = vsyncpa [#allocation4], 1 }
 0x480   :  { %1072 = vsyncpa [#allocation6], 1 }

</bundles_post_ra>
